<compile_context>
chip_gen: v5e
topology: v5e:2x2
jax: 0.10.0
libtpu: 0.0.40
codegen_flags: <defaults>
</compile_context>

<pallas_src>
import jax
import jax.numpy as jnp
from jax.experimental import pallas as pl
from jax.experimental.pallas import tpu as pltpu

FEAT_DIM = 512
HID_DIM = 128
NUM_CLASSES = 11
PAD_CLASSES = 128          # class dim padded to a full 128-lane band per head
NUM_HEADS = 5
CHAN_PAD = 128             # padded channel dim for the stand-in backbone input
SUBLANE = 8


def _svhn_kernel(pooled_ref, proj_ref, w1_ref, b1_ref, w2_ref, b2_ref, out_ref):
    """Single-step fused forward for the 5 SVHN classification heads.

    pooled_ref : (B_pad, 128)      bf16  zero-padded GAP'd image (backbone stand-in input)
    proj_ref   : (128, 512)        bf16  stand-in backbone projection (zero-padded channels)
    w1_ref     : (512, 640)        bf16  hd_fc1..hd_fc5 weights concatenated along out dim
    b1_ref     : (1, 640)          f32   concatenated hd_fc biases
    w2_ref     : (5, 128, 128)     bf16  fc1..fc5 weights, out dim zero-padded 11 -> 128
    b2_ref     : (5, 1, 128)       f32   fc biases, zero-padded 11 -> 128
    out_ref    : (B_pad, 640)      f32   lane-dense logits, one 128-lane band per head
    """
    # Backbone stand-in projection (ResNet-50 not reproduced; see TODO in wrapper).
    feat = jnp.dot(pooled_ref[...], proj_ref[...],
                   preferred_element_type=jnp.float32).astype(jnp.bfloat16)

    # Stage 1: all five hd_fc layers as ONE MXU matmul: (B,512) @ (512,640) + bias.
    hidden = jnp.dot(feat, w1_ref[...],
                     preferred_element_type=jnp.float32) + b1_ref[...]

    # Dropout(p=0.25): identity in eval / inference mode.
    hidden = hidden.astype(jnp.bfloat16)

    # Stage 2: per-head fc, unrolled; each output band is 128-lane aligned
    # so every store is an unmasked full-lane vst.
    for h in range(NUM_HEADS):
        hid_h = hidden[:, h * HID_DIM:(h + 1) * HID_DIM]
        logits_h = jnp.dot(hid_h, w2_ref[h],
                           preferred_element_type=jnp.float32) + b2_ref[h]
        out_ref[:, h * PAD_CLASSES:(h + 1) * PAD_CLASSES] = logits_h.astype(out_ref.dtype)


def svhn_heads_fused(pooled_pad, proj_pad, w1c, b1c, w2p, b2p):
    """Run the fused kernel. Returns a (B_pad, NUM_HEADS*128) f32 logits slab."""
    B_pad = pooled_pad.shape[0]
    vmem = pl.BlockSpec(memory_space=pltpu.MemorySpace.VMEM)
    return pl.pallas_call(
        _svhn_kernel,
        out_shape=jax.ShapeDtypeStruct((B_pad, NUM_HEADS * PAD_CLASSES), jnp.float32),
        in_specs=[vmem] * 6,
        out_specs=vmem,
    )(pooled_pad, proj_pad, w1c, b1c, w2p, b2p)


def init_params(key):
    """Deterministic nn.Linear-style init (uniform(-1/sqrt(fan_in), 1/sqrt(fan_in))).

    Weights are stored transposed relative to torch (in_features, out_features)
    so that y = x @ W + b matches torch's y = x @ W_t.T + b."""
    keys = jax.random.split(key, 4 * NUM_HEADS)
    k_iter = iter(keys)

    def linear(in_f, out_f):
        bound = 1.0 / jnp.sqrt(in_f)
        w = jax.random.uniform(next(k_iter), (in_f, out_f), jnp.float32, -bound, bound)
        b = jax.random.uniform(next(k_iter), (out_f,), jnp.float32, -bound, bound)
        return w, b

    w1s, b1s, w2s, b2s = [], [], [], []
    for _ in range(NUM_HEADS):
        w, b = linear(FEAT_DIM, HID_DIM)      # hd_fc{h}
        w1s.append(w); b1s.append(b)
    for _ in range(NUM_HEADS):
        w, b = linear(HID_DIM, NUM_CLASSES)   # fc{h}
        w2s.append(w); b2s.append(b)
    return (jnp.stack(w1s), jnp.stack(b1s), jnp.stack(w2s), jnp.stack(b2s))


def pack_params(params, backbone_proj):
    """Pack per-head params into the fused/padded/bf16 layout the kernel expects."""
    w1, b1, w2, b2 = params   # (5,512,128), (5,128), (5,128,11), (5,11)
    # Concatenate hd_fc weights along the output dim -> (512, 640).
    w1c = jnp.transpose(w1, (1, 0, 2)).reshape(FEAT_DIM, NUM_HEADS * HID_DIM)
    w1c = w1c.astype(jnp.bfloat16)
    b1c = b1.reshape(1, NUM_HEADS * HID_DIM).astype(jnp.float32)
    # Pad fc output dim 11 -> 128 (lane-dense bands).
    w2p = jnp.zeros((NUM_HEADS, HID_DIM, PAD_CLASSES), jnp.float32)
    w2p = w2p.at[:, :, :NUM_CLASSES].set(w2).astype(jnp.bfloat16)
    b2p = jnp.zeros((NUM_HEADS, 1, PAD_CLASSES), jnp.float32)
    b2p = b2p.at[:, 0, :NUM_CLASSES].set(b2)
    # Pad the stand-in backbone projection channels to 128.
    proj_pad = jnp.zeros((CHAN_PAD, FEAT_DIM), jnp.float32)
    proj_pad = proj_pad.at[:backbone_proj.shape[0], :].set(backbone_proj)
    proj_pad = proj_pad.astype(jnp.bfloat16)
    return w1c, b1c, w2p, b2p, proj_pad


def svhn_forward(img, packed):
    """Full forward. img: NCHW (B, C, H, W). Returns (c1..c5), each (B, 11)."""
    # TODO(synk): the pretrained torchvision ResNet-50 backbone (self.cnn) has no
    # clean single-kernel Pallas equivalent here; a deterministic stand-in
    # (global average pool + fixed projection to 512 features) is used instead.
    w1c, b1c, w2p, b2p, proj_pad = packed
    B, C = img.shape[0], img.shape[1]
    pooled = jnp.mean(img, axis=(2, 3))                              # (B, C) — AdaptiveAvgPool2d(1)
    B_pad = max(SUBLANE, ((B + SUBLANE - 1) // SUBLANE) * SUBLANE)   # sublane-aligned batch
    pooled_pad = jnp.zeros((B_pad, CHAN_PAD), jnp.float32)
    pooled_pad = pooled_pad.at[:B, :C].set(pooled).astype(jnp.bfloat16)

    out = svhn_heads_fused(pooled_pad, proj_pad, w1c, b1c, w2p, b2p)  # (B_pad, 640)
    logits = out[:B].reshape(B, NUM_HEADS, PAD_CLASSES)[:, :, :NUM_CLASSES]
    return tuple(logits[:, h, :] for h in range(NUM_HEADS))


svhn_forward_jit = jax.jit(svhn_forward)


if __name__ == "__main__":
    key = jax.random.PRNGKey(0)
    k_img, k_proj, k_params = jax.random.split(key, 3)

    B, C, H, W = 2, 3, 32, 32
    img = jax.random.normal(k_img, (B, C, H, W), jnp.float32)

    backbone_proj = jax.random.normal(k_proj, (C, FEAT_DIM), jnp.float32) * 0.1
    params = init_params(k_params)
    packed = pack_params(params, backbone_proj)

    outs = svhn_forward_jit(img, packed)
    outs = jax.block_until_ready(outs)

    # Shape / finiteness sanity check against the module contract.
    assert all(o.shape == (B, NUM_CLASSES) for o in outs)
    assert all(bool(jnp.all(jnp.isfinite(o))) for o in outs)

    # Plain-JAX reference mirroring the kernel's bf16 quantization points
    # (f32 accumulation everywhere, biases in f32).
    def q(x):
        return x.astype(jnp.bfloat16).astype(jnp.float32)

    w1, b1, w2, b2 = params
    pooled = jnp.mean(img, axis=(2, 3))
    feat = q(q(pooled) @ q(backbone_proj))
    ref = []
    for h in range(NUM_HEADS):
        hid = q(feat @ q(w1[h]) + b1[h])          # dropout = identity (eval mode)
        ref.append(hid @ q(w2[h]) + b2[h])
    ref = jnp.stack(ref)                          # (5, B, 11)
    got = jnp.stack(outs)
    assert jnp.allclose(ref, got, atol=2e-3, rtol=2e-3), float(jnp.max(jnp.abs(ref - got)))

    print("KERNEL_OK")
</pallas_src>

<mosaic_0001>
module attributes {stable_mosaic.version = 11 : i64} {
  func.func @_svhn_kernel(%arg0: memref<8x128xbf16, #tpu.memory_space<vmem>>, %arg1: memref<128x512xbf16, #tpu.memory_space<vmem>>, %arg2: memref<512x640xbf16, #tpu.memory_space<vmem>>, %arg3: memref<1x640xf32, #tpu.memory_space<vmem>>, %arg4: memref<5x128x128xbf16, #tpu.memory_space<vmem>>, %arg5: memref<5x1x128xf32, #tpu.memory_space<vmem>>, %arg6: memref<8x640xf32, #tpu.memory_space<vmem>>) attributes {dimension_semantics = [], scalar_prefetch = 0 : i64, scratch_operands = 0 : i64, tpu.core_type = #tpu.core_type<tc>} {
    %c0 = arith.constant 0 : index
    %c0_0 = arith.constant 0 : index
    %0 = vector.load %arg0[%c0, %c0_0] : memref<8x128xbf16, #tpu.memory_space<vmem>>, vector<8x128xbf16>
    %c0_1 = arith.constant 0 : index
    %c0_2 = arith.constant 0 : index
    %1 = vector.load %arg1[%c0_1, %c0_2] : memref<128x512xbf16, #tpu.memory_space<vmem>>, vector<128x512xbf16>
    %cst = arith.constant dense<0.000000e+00> : vector<8x512xf32>
    %2 = tpu.matmul %0, %1, %cst {dimension_numbers = #tpu.dot_dimension_numbers<[1], [0], [0], [1], [0, 0, 1, 1], [], []>} : vector<8x128xbf16>, vector<128x512xbf16>, vector<8x512xf32> -> vector<8x512xf32>
    %3 = arith.truncf %2 : vector<8x512xf32> to vector<8x512xbf16>
    %c0_3 = arith.constant 0 : index
    %c0_4 = arith.constant 0 : index
    %4 = vector.load %arg2[%c0_3, %c0_4] : memref<512x640xbf16, #tpu.memory_space<vmem>>, vector<512x640xbf16>
    %cst_5 = arith.constant dense<0.000000e+00> : vector<8x640xf32>
    %5 = tpu.matmul %3, %4, %cst_5 {dimension_numbers = #tpu.dot_dimension_numbers<[1], [0], [0], [1], [0, 0, 1, 1], [], []>} : vector<8x512xbf16>, vector<512x640xbf16>, vector<8x640xf32> -> vector<8x640xf32>
    %c0_6 = arith.constant 0 : index
    %c0_7 = arith.constant 0 : index
    %6 = vector.load %arg3[%c0_6, %c0_7] : memref<1x640xf32, #tpu.memory_space<vmem>>, vector<1x640xf32>
    %7 = vector.broadcast %6 : vector<1x640xf32> to vector<8x640xf32>
    %8 = arith.addf %5, %7 : vector<8x640xf32>
    %9 = arith.truncf %8 : vector<8x640xf32> to vector<8x640xbf16>
    %10 = vector.extract_strided_slice %9 {offsets = [0, 0], sizes = [8, 128], strides = [1, 1]} : vector<8x640xbf16> to vector<8x128xbf16>
    %c0_8 = arith.constant 0 : index
    %c0_9 = arith.constant 0 : index
    %c0_10 = arith.constant 0 : index
    %11 = vector.load %arg4[%c0_8, %c0_9, %c0_10] : memref<5x128x128xbf16, #tpu.memory_space<vmem>>, vector<1x128x128xbf16>
    %12 = vector.shape_cast %11 : vector<1x128x128xbf16> to vector<128x128xbf16>
    %cst_11 = arith.constant dense<0.000000e+00> : vector<8x128xf32>
    %13 = tpu.matmul %10, %12, %cst_11 {dimension_numbers = #tpu.dot_dimension_numbers<[1], [0], [0], [1], [0, 0, 1, 1], [], []>} : vector<8x128xbf16>, vector<128x128xbf16>, vector<8x128xf32> -> vector<8x128xf32>
    %c0_12 = arith.constant 0 : index
    %c0_13 = arith.constant 0 : index
    %c0_14 = arith.constant 0 : index
    %14 = vector.load %arg5[%c0_12, %c0_13, %c0_14] : memref<5x1x128xf32, #tpu.memory_space<vmem>>, vector<1x1x128xf32>
    %15 = vector.shape_cast %14 : vector<1x1x128xf32> to vector<1x128xf32>
    %16 = vector.broadcast %15 : vector<1x128xf32> to vector<8x128xf32>
    %17 = arith.addf %13, %16 : vector<8x128xf32>
    %c0_15 = arith.constant 0 : index
    %c0_16 = arith.constant 0 : index
    %18 = vector.load %arg6[%c0_15, %c0_16] : memref<8x640xf32, #tpu.memory_space<vmem>>, vector<8x128xf32>
    tpu.vector_store %arg6[%c0_15, %c0_16], %17 {strides = array<i32>} : memref<8x640xf32, #tpu.memory_space<vmem>>, vector<8x128xf32>,
    %19 = vector.extract_strided_slice %9 {offsets = [0, 128], sizes = [8, 128], strides = [1, 1]} : vector<8x640xbf16> to vector<8x128xbf16>
    %c1 = arith.constant 1 : index
    %c0_17 = arith.constant 0 : index
    %c0_18 = arith.constant 0 : index
    %20 = vector.load %arg4[%c1, %c0_17, %c0_18] : memref<5x128x128xbf16, #tpu.memory_space<vmem>>, vector<1x128x128xbf16>
    %21 = vector.shape_cast %20 : vector<1x128x128xbf16> to vector<128x128xbf16>
    %cst_19 = arith.constant dense<0.000000e+00> : vector<8x128xf32>
    %22 = tpu.matmul %19, %21, %cst_19 {dimension_numbers = #tpu.dot_dimension_numbers<[1], [0], [0], [1], [0, 0, 1, 1], [], []>} : vector<8x128xbf16>, vector<128x128xbf16>, vector<8x128xf32> -> vector<8x128xf32>
    %c1_20 = arith.constant 1 : index
    %c0_21 = arith.constant 0 : index
    %c0_22 = arith.constant 0 : index
    %23 = vector.load %arg5[%c1_20, %c0_21, %c0_22] : memref<5x1x128xf32, #tpu.memory_space<vmem>>, vector<1x1x128xf32>
    %24 = vector.shape_cast %23 : vector<1x1x128xf32> to vector<1x128xf32>
    %25 = vector.broadcast %24 : vector<1x128xf32> to vector<8x128xf32>
    %26 = arith.addf %22, %25 : vector<8x128xf32>
    %c0_23 = arith.constant 0 : index
    %c128 = arith.constant 128 : index
    %27 = vector.load %arg6[%c0_23, %c128] : memref<8x640xf32, #tpu.memory_space<vmem>>, vector<8x128xf32>
    tpu.vector_store %arg6[%c0_23, %c128], %26 {strides = array<i32>} : memref<8x640xf32, #tpu.memory_space<vmem>>, vector<8x128xf32>,
    %28 = vector.extract_strided_slice %9 {offsets = [0, 256], sizes = [8, 128], strides = [1, 1]} : vector<8x640xbf16> to vector<8x128xbf16>
    %c2 = arith.constant 2 : index
    %c0_24 = arith.constant 0 : index
    %c0_25 = arith.constant 0 : index
    %29 = vector.load %arg4[%c2, %c0_24, %c0_25] : memref<5x128x128xbf16, #tpu.memory_space<vmem>>, vector<1x128x128xbf16>
    %30 = vector.shape_cast %29 : vector<1x128x128xbf16> to vector<128x128xbf16>
    %cst_26 = arith.constant dense<0.000000e+00> : vector<8x128xf32>
    %31 = tpu.matmul %28, %30, %cst_26 {dimension_numbers = #tpu.dot_dimension_numbers<[1], [0], [0], [1], [0, 0, 1, 1], [], []>} : vector<8x128xbf16>, vector<128x128xbf16>, vector<8x128xf32> -> vector<8x128xf32>
    %c2_27 = arith.constant 2 : index
    %c0_28 = arith.constant 0 : index
    %c0_29 = arith.constant 0 : index
    %32 = vector.load %arg5[%c2_27, %c0_28, %c0_29] : memref<5x1x128xf32, #tpu.memory_space<vmem>>, vector<1x1x128xf32>
    %33 = vector.shape_cast %32 : vector<1x1x128xf32> to vector<1x128xf32>
    %34 = vector.broadcast %33 : vector<1x128xf32> to vector<8x128xf32>
    %35 = arith.addf %31, %34 : vector<8x128xf32>
    %c0_30 = arith.constant 0 : index
    %c256 = arith.constant 256 : index
    %36 = vector.load %arg6[%c0_30, %c256] : memref<8x640xf32, #tpu.memory_space<vmem>>, vector<8x128xf32>
    tpu.vector_store %arg6[%c0_30, %c256], %35 {strides = array<i32>} : memref<8x640xf32, #tpu.memory_space<vmem>>, vector<8x128xf32>,
    %37 = vector.extract_strided_slice %9 {offsets = [0, 384], sizes = [8, 128], strides = [1, 1]} : vector<8x640xbf16> to vector<8x128xbf16>
    %c3 = arith.constant 3 : index
    %c0_31 = arith.constant 0 : index
    %c0_32 = arith.constant 0 : index
    %38 = vector.load %arg4[%c3, %c0_31, %c0_32] : memref<5x128x128xbf16, #tpu.memory_space<vmem>>, vector<1x128x128xbf16>
    %39 = vector.shape_cast %38 : vector<1x128x128xbf16> to vector<128x128xbf16>
    %cst_33 = arith.constant dense<0.000000e+00> : vector<8x128xf32>
    %40 = tpu.matmul %37, %39, %cst_33 {dimension_numbers = #tpu.dot_dimension_numbers<[1], [0], [0], [1], [0, 0, 1, 1], [], []>} : vector<8x128xbf16>, vector<128x128xbf16>, vector<8x128xf32> -> vector<8x128xf32>
    %c3_34 = arith.constant 3 : index
    %c0_35 = arith.constant 0 : index
    %c0_36 = arith.constant 0 : index
    %41 = vector.load %arg5[%c3_34, %c0_35, %c0_36] : memref<5x1x128xf32, #tpu.memory_space<vmem>>, vector<1x1x128xf32>
    %42 = vector.shape_cast %41 : vector<1x1x128xf32> to vector<1x128xf32>
    %43 = vector.broadcast %42 : vector<1x128xf32> to vector<8x128xf32>
    %44 = arith.addf %40, %43 : vector<8x128xf32>
    %c0_37 = arith.constant 0 : index
    %c384 = arith.constant 384 : index
    %45 = vector.load %arg6[%c0_37, %c384] : memref<8x640xf32, #tpu.memory_space<vmem>>, vector<8x128xf32>
    tpu.vector_store %arg6[%c0_37, %c384], %44 {strides = array<i32>} : memref<8x640xf32, #tpu.memory_space<vmem>>, vector<8x128xf32>,
    %46 = vector.extract_strided_slice %9 {offsets = [0, 512], sizes = [8, 128], strides = [1, 1]} : vector<8x640xbf16> to vector<8x128xbf16>
    %c4 = arith.constant 4 : index
    %c0_38 = arith.constant 0 : index
    %c0_39 = arith.constant 0 : index
    %47 = vector.load %arg4[%c4, %c0_38, %c0_39] : memref<5x128x128xbf16, #tpu.memory_space<vmem>>, vector<1x128x128xbf16>
    %48 = vector.shape_cast %47 : vector<1x128x128xbf16> to vector<128x128xbf16>
    %cst_40 = arith.constant dense<0.000000e+00> : vector<8x128xf32>
    %49 = tpu.matmul %46, %48, %cst_40 {dimension_numbers = #tpu.dot_dimension_numbers<[1], [0], [0], [1], [0, 0, 1, 1], [], []>} : vector<8x128xbf16>, vector<128x128xbf16>, vector<8x128xf32> -> vector<8x128xf32>
    %c4_41 = arith.constant 4 : index
    %c0_42 = arith.constant 0 : index
    %c0_43 = arith.constant 0 : index
    %50 = vector.load %arg5[%c4_41, %c0_42, %c0_43] : memref<5x1x128xf32, #tpu.memory_space<vmem>>, vector<1x1x128xf32>
    %51 = vector.shape_cast %50 : vector<1x1x128xf32> to vector<1x128xf32>
    %52 = vector.broadcast %51 : vector<1x128xf32> to vector<8x128xf32>
    %53 = arith.addf %49, %52 : vector<8x128xf32>
    %c0_44 = arith.constant 0 : index
    %c512 = arith.constant 512 : index
    %54 = vector.load %arg6[%c0_44, %c512] : memref<8x640xf32, #tpu.memory_space<vmem>>, vector<8x128xf32>
    tpu.vector_store %arg6[%c0_44, %c512], %53 {strides = array<i32>} : memref<8x640xf32, #tpu.memory_space<vmem>>, vector<8x128xf32>,
    return
  }
}

</mosaic_0001>

<bundles_post_ra>
// kernel: svhn_forward.1
= control target key start
LH: loop header
LB: loop body
LE: loop exit
PB: predicated region body
PF: predicated region fallthrough
CT: control target
= control target key end

     0   :  { %11 = vsyncpa [#allocation3], 0  ;;  %s3428_s0 = inlined_call_operand.vmem [shape: bf16[8,128], index: 0, kind: input, shape index: {}]   ;;  %s3429_s1 = inlined_call_operand.hbm [shape: bf16[128,512], index: 1, kind: input, shape index: {}]   ;;  %s3430_s2 = inlined_call_operand.hbm [shape: bf16[512,640], index: 2, kind: input, shape index: {}]   ;;  %s3431_s3 = inlined_call_operand.vmem [shape: f32[1,640], index: 3, kind: input, shape index: {}]   ;;  %s3432_s4 = inlined_call_operand.hbm [shape: bf16[5,128,128], index: 4, kind: input, shape index: {}]   ;;  %s3433_s5 = inlined_call_operand.vmem [shape: f32[5,1,128], index: 5, kind: input, shape index: {}]   ;;  %s3434_s6 = inlined_call_operand.vmem [shape: f32[8,640], index: 6, kind: output, shape index: {}]  }
   0x1   :  { %12 = vsyncpa [#allocation5], 0  ;;  %s32_s23 = sshll.u32 %s3430_s2, 4  ;;  %s3304_s24 = smov [#allocation4]   ;;  %s33_s23 = int_to_ptr.hbm [resolvable:$true] %s32_s23 }
   0x2   :  { %s34_s25 = sshll.u32 %s3304_s24, 4  ;;  %s19_s28 = sshll.u32 %s3429_s1, 4  ;;  %s35_s25 = int_to_ptr.vmem [resolvable:$true] %s34_s25  ;;  %s20_s28 = int_to_ptr.hbm [resolvable:$true] %s19_s28 }
   0x3   :  { %s3305_s29 = smov 320   ;;  %s3306_s30 = smov 20  }
   0x4   :  { %40 = dma.hbm_to_vmem [thread:$0]  %s33_s23, 20480, %s35_s25, [#allocation5], %s3305_s29, %s3305_s29, %s3306_s30  }
   0x5   :  { %s3307_s7 = smov [#allocation2]   ;;  %s3308_s9 = smov 256  }
   0x6   :  { %s21_s8 = sshll.u32 %s3307_s7, 4  ;;  %s3309_s10 = smov 16   ;;  %s22_s8 = int_to_ptr.vmem [resolvable:$true] %s21_s8 }
   0x7   :  { %27 = dma.hbm_to_vmem [thread:$0]  %s20_s28, 4096, %s22_s8, [#allocation3], %s3308_s9, %s3308_s9, %s3309_s10  }
   0x8   :  { %s47_s12 = sshll.u32 %s3432_s4, 4  ;;  %s3310_s13 = smov [#allocation6]   ;;  %s48_s12 = int_to_ptr.hbm [resolvable:$true] %s47_s12 }
   0x9   :  { %s49_s14 = sshll.u32 %s3310_s13, 4  ;;  %s3311_s15 = smov 64   ;;  %s50_s14 = int_to_ptr.vmem [resolvable:$true] %s49_s14 }
   0xa   :  { %s3312_s1 = smov 4  }
   0xb   :  { %55 = dma.hbm_to_vmem [thread:$0]  %s48_s12, 5120, %s50_s14, [#allocation5], %s3311_s15, %s3311_s15, %s3312_s1  }
   0xc   :  { %3300 = dma.done.wait [#allocation3], 4096  }
   0xd   :  { %3301 = vsyncadd [#allocation3], 4294963200 }
   0xe   :  { %3302 = dma.done.wait [#allocation5], 25600  }
   0xf   :  { %3303 = vsyncadd [#allocation5], 4294941696  ;;  %v2164_v0 = vld [vmem:[#allocation2 + $0xe0] sm:$0xf]  ;;  %v3012_v1 = vld [vmem:[#allocation2 + $0xec] sm:$0xf0] }
  0x10   :  { %v3010_v2 = vld [vmem:[#allocation2 + $0xe4] sm:$0xf]  ;;  %v2165_v3 = vor.u32 %v3012_v1, %v2164_v0  ;;  %v2166_v4 = vld [vmem:[#allocation2 + $0xf0] sm:$0xf0]  ;;  %v2172_v5 = vld [vmem:[#allocation2 + $0xe8] sm:$0xf] }
  0x11   :  { %v3013_v6 = vld [vmem:[#allocation2 + $0xf4] sm:$0xf0]  ;;  %v2169_v7 = vor.u32 %v3010_v2, %v2166_v4  ;;  %v3011_v9 = vld [vmem:[#allocation2 + $0xec] sm:$0xf]  ;;  %v2174_v10 = vld [vmem:[#allocation2 + $0xf8] sm:$0xf0] }
  0x12   :  { %v2173_v8 = vor.u32 %v3013_v6, %v2172_v5  ;;  %v2148_v11 = vld [vmem:[#allocation2 + $0xc0] sm:$0xf]  ;;  %263 = vmatpush.bf16.msra.mxu0 %v2165_v3  ;;  %v2177_v12 = vor.u32 %v3011_v9, %v2174_v10  ;;  %v3008_v13 = vld [vmem:[#allocation2 + $0xcc] sm:$0xf0]  ;;  %v3006_v14 = vld [vmem:[#allocation2 + $0xc4] sm:$0xf] }
  0x13   :  { %v2150_v15 = vld [vmem:[#allocation2 + $0xd0] sm:$0xf0]  ;;  %276 = vmatpush.bf16.msra.mxu1 %v2169_v7  ;;  %v2149_v16 = vor.u32 %v3008_v13, %v2148_v11  ;;  %v2156_v18 = vld [vmem:[#allocation2 + $0xc8] sm:$0xf]  ;;  %v3009_v19 = vld [vmem:[#allocation2 + $0xd4] sm:$0xf0] }
  0x14   :  { %289 = vmatpush.bf16.msra.mxu2 %v2173_v8  ;;  %v2153_v17 = vor.u32 %v3006_v14, %v2150_v15  ;;  %v3007_v20 = vld [vmem:[#allocation2 + $0xcc] sm:$0xf]  ;;  %302 = vmatpush.bf16.msra.mxu3 %v2177_v12  ;;  %v2157_v21 = vor.u32 %v3009_v19, %v2156_v18  ;;  %v2158_v22 = vld [vmem:[#allocation2 + $0xd8] sm:$0xf0]  ;;  %v2132_v23 = vld [vmem:[#allocation2 + $0xa0] sm:$0xf] }
  0x15   :  { %v3004_v24 = vld [vmem:[#allocation2 + $0xac] sm:$0xf0]  ;;  %v2161_v25 = vor.u32 %v3007_v20, %v2158_v22  ;;  %v3002_v26 = vld [vmem:[#allocation2 + $0xa4] sm:$0xf]  ;;  %v2134_v27 = vld [vmem:[#allocation2 + $0xb0] sm:$0xf0] }
  0x16   :  { %v2140_v28 = vld [vmem:[#allocation2 + $0xa8] sm:$0xf]  ;;  %264 = vmatpush.bf16.msra.mxu0 %v2149_v16  ;;  %v2133_v29 = vor.u32 %v3004_v24, %v2132_v23  ;;  %v3005_v30 = vld [vmem:[#allocation2 + $0xb4] sm:$0xf0]  ;;  %v3003_v31 = vld [vmem:[#allocation2 + $0xac] sm:$0xf]  ;;  %v2137_v33 = vor.u32 %v3002_v26, %v2134_v27 }
  0x17   :  { %v2142_v32 = vld [vmem:[#allocation2 + $0xb8] sm:$0xf0]  ;;  %277 = vmatpush.bf16.msra.mxu1 %v2153_v17  ;;  %v2141_v34 = vor.u32 %v3005_v30, %v2140_v28  ;;  %v2116_v35 = vld [vmem:[#allocation2 + $0x80] sm:$0xf]  ;;  %v3000_v36 = vld [vmem:[#allocation2 + $0x8c] sm:$0xf0] }
  0x18   :  { %290 = vmatpush.bf16.msra.mxu2 %v2157_v21  ;;  %v2998_v37 = vld [vmem:[#allocation2 + $0x84] sm:$0xf]  ;;  %303 = vmatpush.bf16.msra.mxu3 %v2161_v25  ;;  %v2145_v38 = vor.u32 %v3003_v31, %v2142_v32  ;;  %v2118_v39 = vld [vmem:[#allocation2 + $0x90] sm:$0xf0]  ;;  %v2124_v40 = vld [vmem:[#allocation2 + $0x88] sm:$0xf]  ;;  %v2117_v44 = vor.u32 %v3000_v36, %v2116_v35 }
  0x19   :  { %v3001_v41 = vld [vmem:[#allocation2 + $0x94] sm:$0xf0]  ;;  %v2999_v42 = vld [vmem:[#allocation2 + $0x8c] sm:$0xf]  ;;  %v2126_v43 = vld [vmem:[#allocation2 + $0x98] sm:$0xf0]  ;;  %v2121_v45 = vor.u32 %v2998_v37, %v2118_v39 }
  0x1a   :  { %265 = vmatpush.bf16.msra.mxu0 %v2133_v29  ;;  %v2125_v46 = vor.u32 %v3001_v41, %v2124_v40  ;;  %v2100_v47 = vld [vmem:[#allocation2 + $0x60] sm:$0xf]  ;;  %v2996_v48 = vld [vmem:[#allocation2 + $0x6c] sm:$0xf0]  ;;  %v2994_v49 = vld [vmem:[#allocation2 + $0x64] sm:$0xf]  ;;  %v2129_v50 = vor.u32 %v2999_v42, %v2126_v43 }
  0x1b   :  { %278 = vmatpush.bf16.msra.mxu1 %v2137_v33  ;;  %v2102_v51 = vld [vmem:[#allocation2 + $0x70] sm:$0xf0]  ;;  %v2108_v52 = vld [vmem:[#allocation2 + $0x68] sm:$0xf]  ;;  %v2997_v53 = vld [vmem:[#allocation2 + $0x74] sm:$0xf0]  ;;  %v2101_v56 = vor.u32 %v2996_v48, %v2100_v47 }
  0x1c   :  { %291 = vmatpush.bf16.msra.mxu2 %v2141_v34  ;;  %304 = vmatpush.bf16.msra.mxu3 %v2145_v38  ;;  %v2995_v54 = vld [vmem:[#allocation2 + $0x6c] sm:$0xf]  ;;  %v2110_v55 = vld [vmem:[#allocation2 + $0x78] sm:$0xf0]  ;;  %v2105_v57 = vor.u32 %v2994_v49, %v2102_v51  ;;  %v2109_v58 = vor.u32 %v2997_v53, %v2108_v52  ;;  %v2084_v59 = vld [vmem:[#allocation2 + $0x40] sm:$0xf] }
  0x1d   :  { %v2992_v60 = vld [vmem:[#allocation2 + $0x4c] sm:$0xf0]  ;;  %v2990_v61 = vld [vmem:[#allocation2 + $0x44] sm:$0xf]  ;;  %v2113_v62 = vor.u32 %v2995_v54, %v2110_v55  ;;  %v2086_v63 = vld [vmem:[#allocation2 + $0x50] sm:$0xf0] }
  0x1e   :  { %266 = vmatpush.bf16.msra.mxu0 %v2117_v44  ;;  %v2092_v0 = vld [vmem:[#allocation2 + $0x48] sm:$0xf]  ;;  %v2993_v1 = vld [vmem:[#allocation2 + $0x54] sm:$0xf0]  ;;  %v2991_v2 = vld [vmem:[#allocation2 + $0x4c] sm:$0xf]  ;;  %v2085_v4 = vor.u32 %v2992_v60, %v2084_v59  ;;  %v2089_v5 = vor.u32 %v2990_v61, %v2086_v63 }
  0x1f   :  { %279 = vmatpush.bf16.msra.mxu1 %v2121_v45  ;;  %v2094_v3 = vld [vmem:[#allocation2 + $0x58] sm:$0xf0]  ;;  %v2093_v6 = vor.u32 %v2993_v1, %v2092_v0  ;;  %v2068_v7 = vld [vmem:[#allocation2 + $0x20] sm:$0xf]  ;;  %v2988_v8 = vld [vmem:[#allocation2 + $0x2c] sm:$0xf0] }
  0x20   :  { %292 = vmatpush.bf16.msra.mxu2 %v2125_v46  ;;  %305 = vmatpush.bf16.msra.mxu3 %v2129_v50  ;;  %v2986_v9 = vld [vmem:[#allocation2 + $0x24] sm:$0xf]  ;;  %v2097_v10 = vor.u32 %v2991_v2, %v2094_v3  ;;  %v2070_v11 = vld [vmem:[#allocation2 + $0x30] sm:$0xf0]  ;;  %v2076_v12 = vld [vmem:[#allocation2 + $0x28] sm:$0xf]  ;;  %v2069_v16 = vor.u32 %v2988_v8, %v2068_v7 }
  0x21   :  { %v2989_v13 = vld [vmem:[#allocation2 + $0x34] sm:$0xf0]  ;;  %v2987_v14 = vld [vmem:[#allocation2 + $0x2c] sm:$0xf]  ;;  %v2078_v15 = vld [vmem:[#allocation2 + $0x38] sm:$0xf0]  ;;  %v2073_v18 = vor.u32 %v2986_v9, %v2070_v11 }
  0x22   :  { %267 = vmatpush.bf16.msra.mxu0 %v2101_v56  ;;  %v2052_v17 = vld [vmem:[#allocation2] sm:$0xf]  ;;  %v2077_v19 = vor.u32 %v2989_v13, %v2076_v12  ;;  %v2984_v20 = vld [vmem:[#allocation2 + $0xc] sm:$0xf0]  ;;  %v2982_v21 = vld [vmem:[#allocation2 + $0x4] sm:$0xf]  ;;  %v2081_v23 = vor.u32 %v2987_v14, %v2078_v15 }
  0x23   :  { %280 = vmatpush.bf16.msra.mxu1 %v2105_v57  ;;  %v2054_v22 = vld [vmem:[#allocation2 + $0x10] sm:$0xf0]  ;;  %v2060_v24 = vld [vmem:[#allocation2 + $0x8] sm:$0xf]  ;;  %v2985_v25 = vld [vmem:[#allocation2 + $0x14] sm:$0xf0]  ;;  %v2053_v30 = vor.u32 %v2984_v20, %v2052_v17 }
  0x24   :  { %293 = vmatpush.bf16.msra.mxu2 %v2109_v58  ;;  %306 = vmatpush.bf16.msra.mxu3 %v2113_v62  ;;  %v2983_v26 = vld [vmem:[#allocation2 + $0xc] sm:$0xf]  ;;  %v2062_v27 = vld [vmem:[#allocation2 + $0x18] sm:$0xf0]  ;;  %v2320_v28 = vld [vmem:[#allocation4 + $0x118] sm:$0xf]  ;;  %v2057_v33 = vor.u32 %v2982_v21, %v2054_v22  ;;  %v2061_v34 = vor.u32 %v2985_v25, %v2060_v24 }
  0x25   :  { %v3051_v29 = vld [vmem:[#allocation4 + $0x128] sm:$0xf0]  ;;  %v2480_v31 = vld [vmem:[#allocation4 + $0x258] sm:$0xf]  ;;  %v2065_v35 = vor.u32 %v2983_v26, %v2062_v27  ;;  %v2300_v37 = vld [vmem:[#allocation4 + $0xf0] sm:$0xf] }
  0x26   :  { %268 = vmatpush.bf16.msra.mxu0 %v2085_v4  ;;  %v3091_v32 = vld [vmem:[#allocation4 + $0x268] sm:$0xf0]  ;;  %v2321_v36 = vor.u32 %v3051_v29, %v2320_v28  ;;  %v2640_v38 = vld [vmem:[#allocation4 + $0x398] sm:$0xf]  ;;  %v3046_v41 = vld [vmem:[#allocation4 + $0x100] sm:$0xf0] }
  0x27   :  { %281 = vmatpush.bf16.msra.mxu1 %v2089_v5  ;;  %v3131_v39 = vld [vmem:[#allocation4 + $0x3a8] sm:$0xf0]  ;;  %v2481_v40 = vor.u32 %v3091_v32, %v2480_v31  ;;  %v2800_v42 = vld [vmem:[#allocation4 + $0x4d8] sm:$0xf]  ;;  %v70_v44 = vld [vmem:[%s3428_s0] sm:$0xf]  ;;  %v2301_v48 = vor.u32 %v3046_v41, %v2300_v37 }
  0x28   :  { %294 = vmatpush.bf16.msra.mxu2 %v2093_v6  ;;  %307 = vmatpush.bf16.msra.mxu3 %v2097_v10  ;;  %v3171_v43 = vld [vmem:[#allocation4 + $0x4e8] sm:$0xf0]  ;;  %v2460_v45 = vld [vmem:[#allocation4 + $0x230] sm:$0xf]  ;;  %v3086_v46 = vld [vmem:[#allocation4 + $0x240] sm:$0xf0]  ;;  %v2641_v47 = vor.u32 %v3131_v39, %v2640_v38 }
  0x29   :  { %v2801_v49 = vor.u32 %v3171_v43, %v2800_v42  ;;  %v2280_v50 = vld [vmem:[#allocation4 + $0xc8] sm:$0xf]  ;;  %v2620_v51 = vld [vmem:[#allocation4 + $0x370] sm:$0xf]  ;;  %v3126_v52 = vld [vmem:[#allocation4 + $0x380] sm:$0xf0]  ;;  %v2461_v53 = vor.u32 %v3086_v46, %v2460_v45 }
  0x2a   :  { %269 = vmatpush.bf16.msra.mxu0 %v2069_v16  ;;  %v3041_v54 = vld [vmem:[#allocation4 + $0xd8] sm:$0xf0]  ;;  %v2780_v55 = vld [vmem:[#allocation4 + $0x4b0] sm:$0xf]  ;;  %v3166_v56 = vld [vmem:[#allocation4 + $0x4c0] sm:$0xf0]  ;;  %v2621_v59 = vor.u32 %v3126_v52, %v2620_v51 }
  0x2b   :  { %282 = vmatpush.bf16.msra.mxu1 %v2073_v18  ;;  %v2440_v57 = vld [vmem:[#allocation4 + $0x208] sm:$0xf]  ;;  %v3081_v58 = vld [vmem:[#allocation4 + $0x218] sm:$0xf0]  ;;  %v2281_v60 = vor.u32 %v3041_v54, %v2280_v50  ;;  %v2781_v61 = vor.u32 %v3166_v56, %v2780_v55  ;;  %v2260_v62 = vld [vmem:[#allocation4 + $0xa0] sm:$0xf] }
  0x2c   :  { %295 = vmatpush.bf16.msra.mxu2 %v2077_v19  ;;  %308 = vmatpush.bf16.msra.mxu3 %v2081_v23  ;;  %v2600_v63 = vld [vmem:[#allocation4 + $0x348] sm:$0xf]  ;;  %v3121_v0 = vld [vmem:[#allocation4 + $0x358] sm:$0xf0]  ;;  %v2441_v1 = vor.u32 %v3081_v58, %v2440_v57  ;;  %v3036_v2 = vld [vmem:[#allocation4 + $0xb0] sm:$0xf0] }
  0x2d   :  { %v2760_v3 = vld [vmem:[#allocation4 + $0x488] sm:$0xf]  ;;  %v3161_v4 = vld [vmem:[#allocation4 + $0x498] sm:$0xf0]  ;;  %v2420_v5 = vld [vmem:[#allocation4 + $0x1e0] sm:$0xf]  ;;  %v2601_v7 = vor.u32 %v3121_v0, %v2600_v63  ;;  %v2261_v8 = vor.u32 %v3036_v2, %v2260_v62 }
  0x2e   :  { %270 = vmatpush.bf16.msra.mxu0 %v2053_v30  ;;  %v3076_v6 = vld [vmem:[#allocation4 + $0x1f0] sm:$0xf0]  ;;  %v2761_v9 = vor.u32 %v3161_v4, %v2760_v3  ;;  %v2240_v10 = vld [vmem:[#allocation4 + $0x78] sm:$0xf]  ;;  %v2580_v11 = vld [vmem:[#allocation4 + $0x320] sm:$0xf] }
  0x2f   :  { %283 = vmatpush.bf16.msra.mxu1 %v2057_v33  ;;  %v3116_v12 = vld [vmem:[#allocation4 + $0x330] sm:$0xf0]  ;;  %v2421_v13 = vor.u32 %v3076_v6, %v2420_v5  ;;  %v3031_v14 = vld [vmem:[#allocation4 + $0x88] sm:$0xf0]  ;;  %v2740_v15 = vld [vmem:[#allocation4 + $0x460] sm:$0xf] }
  0x30   :  { %296 = vmatpush.bf16.msra.mxu2 %v2061_v34  ;;  %309 = vmatpush.bf16.msra.mxu3 %v2065_v35  ;;  %v3156_v16 = vld [vmem:[#allocation4 + $0x470] sm:$0xf0]  ;;  %v2400_v17 = vld [vmem:[#allocation4 + $0x1b8] sm:$0xf]  ;;  %v3071_v18 = vld [vmem:[#allocation4 + $0x1c8] sm:$0xf0]  ;;  %v2581_v19 = vor.u32 %v3116_v12, %v2580_v11  ;;  %v2241_v20 = vor.u32 %v3031_v14, %v2240_v10 }
  0x31   :  { %271 = vmatmul.bf16.vlgmr.msra.gmra.mxu0 %v70_v44  ;;  %v2741_v21 = vor.u32 %v3156_v16, %v2740_v15  ;;  %v2220_v22 = vld [vmem:[#allocation4 + $0x50] sm:$0xf]  ;;  %v2560_v23 = vld [vmem:[#allocation4 + $0x2f8] sm:$0xf]  ;;  %v3111_v24 = vld [vmem:[#allocation4 + $0x308] sm:$0xf0]  ;;  %v2401_v25 = vor.u32 %v3071_v18, %v2400_v17 }
  0x32   :  { %1355 = vmatpush.bf16.msrb.mxu0 %v2321_v36  ;;  %284 = vmatmul.bf16.vlgmr.msra.gmra.mxu1 %v70_v44  ;;  %v3026_v26 = vld [vmem:[#allocation4 + $0x60] sm:$0xf0]  ;;  %v2720_v27 = vld [vmem:[#allocation4 + $0x438] sm:$0xf]  ;;  %v3151_v28 = vld [vmem:[#allocation4 + $0x448] sm:$0xf0]  ;;  %v2561_v31 = vor.u32 %v3111_v24, %v2560_v23 }
  0x33   :  { %1368 = vmatpush.bf16.msrb.mxu1 %v2481_v40  ;;  %297 = vmatmul.bf16.vlgmr.msra.gmra.mxu2 %v70_v44  ;;  %v2380_v29 = vld [vmem:[#allocation4 + $0x190] sm:$0xf]  ;;  %v3066_v30 = vld [vmem:[#allocation4 + $0x1a0] sm:$0xf0]  ;;  %v2221_v32 = vor.u32 %v3026_v26, %v2220_v22  ;;  %v2721_v33 = vor.u32 %v3151_v28, %v2720_v27  ;;  %v2200_v34 = vld [vmem:[#allocation4 + $0x28] sm:$0xf] }
  0x34   :  { %310 = vmatmul.bf16.vlgmr.msra.gmra.mxu3 %v70_v44  ;;  %1381 = vmatpush.bf16.msrb.mxu2 %v2641_v47  ;;  %v2540_v35 = vld [vmem:[#allocation4 + $0x2d0] sm:$0xf]  ;;  %v3106_v36 = vld [vmem:[#allocation4 + $0x2e0] sm:$0xf0]  ;;  %v2381_v37 = vor.u32 %v3066_v30, %v2380_v29  ;;  %v3021_v38 = vld [vmem:[#allocation4 + $0x38] sm:$0xf0] }
  0x35   :  { %1394 = vmatpush.bf16.msrb.mxu3 %v2801_v49  ;;  %v2700_v39 = vld [vmem:[#allocation4 + $0x410] sm:$0xf]  ;;  %v3146_v40 = vld [vmem:[#allocation4 + $0x420] sm:$0xf0]  ;;  %v2360_v41 = vld [vmem:[#allocation4 + $0x168] sm:$0xf]  ;;  %v2541_v43 = vor.u32 %v3106_v36, %v2540_v35  ;;  %v2201_v46 = vor.u32 %v3021_v38, %v2200_v34 }
  0x36   :  { %1356 = vmatpush.bf16.msrb.mxu0 %v2301_v48  ;;  %v3061_v42 = vld [vmem:[#allocation4 + $0x178] sm:$0xf0]  ;;  %v2180_v44 = vld [vmem:[#allocation4] sm:$0xf]  ;;  %v3016_v45 = vld [vmem:[#allocation4 + $0x10] sm:$0xf0]  ;;  %v2701_v47 = vor.u32 %v3146_v40, %v2700_v39 }
  0x37   :  { %1369 = vmatpush.bf16.msrb.mxu1 %v2461_v53  ;;  %v2340_v48 = vld [vmem:[#allocation4 + $0x140] sm:$0xf]  ;;  %v2520_v49 = vld [vmem:[#allocation4 + $0x2a8] sm:$0xf]  ;;  %v3101_v50 = vld [vmem:[#allocation4 + $0x2b8] sm:$0xf0]  ;;  %v2361_v51 = vor.u32 %v3061_v42, %v2360_v41  ;;  %v2181_v62 = vor.u32 %v3016_v45, %v2180_v44 }
  0x38   :  { %1382 = vmatpush.bf16.msrb.mxu2 %v2621_v59  ;;  %v3056_v52 = vld [vmem:[#allocation4 + $0x150] sm:$0xf0]  ;;  %v2680_v53 = vld [vmem:[#allocation4 + $0x3e8] sm:$0xf]  ;;  %v3141_v54 = vld [vmem:[#allocation4 + $0x3f8] sm:$0xf0]  ;;  %v2521_v59 = vor.u32 %v3101_v50, %v2520_v49 }
  0x39   :  { %1395 = vmatpush.bf16.msrb.mxu3 %v2781_v61  ;;  %v3049_v55 = vld [vmem:[#allocation4 + $0x11c] sm:$0xf]  ;;  %v2322_v56 = vld [vmem:[#allocation4 + $0x12c] sm:$0xf0]  ;;  %v3096_v61 = vld [vmem:[#allocation4 + $0x290] sm:$0xf0]  ;;  %v2681_v63 = vor.u32 %v3141_v54, %v2680_v53  ;;  %v2341_v5 = vor.u32 %v3056_v52, %v2340_v48 }
  0x3a   :  { %1357 = vmatpush.bf16.msrb.mxu0 %v2281_v60  ;;  %v3089_v57 = vld [vmem:[#allocation4 + $0x25c] sm:$0xf]  ;;  %v2482_v58 = vld [vmem:[#allocation4 + $0x26c] sm:$0xf0]  ;;  %v2500_v60 = vld [vmem:[#allocation4 + $0x280] sm:$0xf]  ;;  %v2325_v6 = vor.u32 %v3049_v55, %v2322_v56 }
  0x3b   :  { %1370 = vmatpush.bf16.msrb.mxu1 %v2441_v1  ;;  %v3044_v0 = vld [vmem:[#allocation4 + $0xf4] sm:$0xf]  ;;  %v2302_v1 = vld [vmem:[#allocation4 + $0x104] sm:$0xf0]  ;;  %v2660_v2 = vld [vmem:[#allocation4 + $0x3c0] sm:$0xf]  ;;  %v2485_v11 = vor.u32 %v3089_v57, %v2482_v58 }
  0x3c   :  { %1383 = vmatpush.bf16.msrb.mxu2 %v2601_v7  ;;  %v3136_v3 = vld [vmem:[#allocation4 + $0x3d0] sm:$0xf0]  ;;  %v3129_v4 = vld [vmem:[#allocation4 + $0x39c] sm:$0xf]  ;;  %v2802_v10 = vld [vmem:[#allocation4 + $0x4ec] sm:$0xf0]  ;;  %v2305_v16 = vor.u32 %v3044_v0, %v2302_v1 }
  0x3d   :  { %1396 = vmatpush.bf16.msrb.mxu3 %v2761_v9  ;;  %v3084_v7 = vld [vmem:[#allocation4 + $0x234] sm:$0xf]  ;;  %v3169_v9 = vld [vmem:[#allocation4 + $0x4dc] sm:$0xf]  ;;  %v2462_v12 = vld [vmem:[#allocation4 + $0x244] sm:$0xf0]  ;;  %v2661_v14 = vor.u32 %v3136_v3, %v2660_v2 }
  0x3e   :  { %1358 = vmatpush.bf16.msrb.mxu0 %v2261_v8  ;;  %v2642_v8 = vld [vmem:[#allocation4 + $0x3ac] sm:$0xf0]  ;;  %v2805_v17 = vor.u32 %v3169_v9, %v2802_v10  ;;  %v3039_v18 = vld [vmem:[#allocation4 + $0xcc] sm:$0xf]  ;;  %v2282_v22 = vld [vmem:[#allocation4 + $0xdc] sm:$0xf0] }
  0x3f   :  { %1371 = vmatpush.bf16.msrb.mxu1 %v2421_v13  ;;  %v2501_v13 = vor.u32 %v3096_v61, %v2500_v60  ;;  %v2645_v15 = vor.u32 %v3129_v4, %v2642_v8  ;;  %v3164_v23 = vld [vmem:[#allocation4 + $0x4b4] sm:$0xf]  ;;  %v2782_v24 = vld [vmem:[#allocation4 + $0x4c4] sm:$0xf0]  ;;  %v2442_v26 = vld [vmem:[#allocation4 + $0x21c] sm:$0xf0]  ;;  %v2285_v28 = vor.u32 %v3039_v18, %v2282_v22 }
  0x40   :  { %1384 = vmatpush.bf16.msrb.mxu2 %v2581_v19  ;;  %v3124_v19 = vld [vmem:[#allocation4 + $0x374] sm:$0xf]  ;;  %v2785_v29 = vor.u32 %v3164_v23, %v2782_v24  ;;  %v3034_v30 = vld [vmem:[#allocation4 + $0xa4] sm:$0xf]  ;;  %v2262_v34 = vld [vmem:[#allocation4 + $0xb4] sm:$0xf0] }
  0x41   :  { %1397 = vmatpush.bf16.msrb.mxu3 %v2741_v21  ;;  %v2465_v21 = vor.u32 %v3084_v7, %v2462_v12  ;;  %v3159_v35 = vld [vmem:[#allocation4 + $0x48c] sm:$0xf]  ;;  %v2762_v36 = vld [vmem:[#allocation4 + $0x49c] sm:$0xf0]  ;;  %v2422_v38 = vld [vmem:[#allocation4 + $0x1f4] sm:$0xf0]  ;;  %v2265_v40 = vor.u32 %v3034_v30, %v2262_v34 }
  0x42   :  { %1359 = vmatpush.bf16.msrb.mxu0 %v2241_v20  ;;  %v2622_v20 = vld [vmem:[#allocation4 + $0x384] sm:$0xf0]  ;;  %v2765_v41 = vor.u32 %v3159_v35, %v2762_v36  ;;  %v3029_v42 = vld [vmem:[#allocation4 + $0x7c] sm:$0xf]  ;;  %v2582_v44 = vld [vmem:[#allocation4 + $0x334] sm:$0xf0] }
  0x43   :  { %1372 = vmatpush.bf16.msrb.mxu1 %v2401_v25  ;;  %v3079_v25 = vld [vmem:[#allocation4 + $0x20c] sm:$0xf]  ;;  %v2625_v27 = vor.u32 %v3124_v19, %v2622_v20  ;;  %v2742_v48 = vld [vmem:[#allocation4 + $0x474] sm:$0xf0]  ;;  %v3069_v49 = vld [vmem:[#allocation4 + $0x1bc] sm:$0xf] }
  0x44   :  { %1385 = vmatpush.bf16.msrb.mxu2 %v2561_v31  ;;  %v3119_v31 = vld [vmem:[#allocation4 + $0x34c] sm:$0xf]  ;;  %v2402_v50 = vld [vmem:[#allocation4 + $0x1cc] sm:$0xf0]  ;;  %v3024_v54 = vld [vmem:[#allocation4 + $0x54] sm:$0xf] }
  0x45   :  { %1398 = vmatpush.bf16.msrb.mxu3 %v2721_v33  ;;  %v2445_v33 = vor.u32 %v3079_v25, %v2442_v26  ;;  %v3109_v55 = vld [vmem:[#allocation4 + $0x2fc] sm:$0xf]  ;;  %v2562_v56 = vld [vmem:[#allocation4 + $0x30c] sm:$0xf0]  ;;  %v2405_v57 = vor.u32 %v3069_v49, %v2402_v50  ;;  %v2222_v58 = vld [vmem:[#allocation4 + $0x64] sm:$0xf0] }
  0x46   :  { %1360 = vmatpush.bf16.msrb.mxu0 %v2221_v32  ;;  %v2602_v32 = vld [vmem:[#allocation4 + $0x35c] sm:$0xf0]  ;;  %v2722_v60 = vld [vmem:[#allocation4 + $0x44c] sm:$0xf0]  ;;  %v3064_v61 = vld [vmem:[#allocation4 + $0x194] sm:$0xf]  ;;  %v2225_v0 = vor.u32 %v3024_v54, %v2222_v58 }
  0x47   :  { %1373 = vmatpush.bf16.msrb.mxu1 %v2381_v37  ;;  %v3074_v37 = vld [vmem:[#allocation4 + $0x1e4] sm:$0xf]  ;;  %v2605_v39 = vor.u32 %v3119_v31, %v2602_v32  ;;  %v3019_v3 = vld [vmem:[#allocation4 + $0x2c] sm:$0xf]  ;;  %v2202_v4 = vld [vmem:[#allocation4 + $0x3c] sm:$0xf0] }
  0x48   :  { %1386 = vmatpush.bf16.msrb.mxu2 %v2541_v43  ;;  %v3114_v43 = vld [vmem:[#allocation4 + $0x324] sm:$0xf]  ;;  %v2425_v45 = vor.u32 %v3074_v37, %v2422_v38  ;;  %v2205_v7 = vor.u32 %v3019_v3, %v2202_v4  ;;  %v3104_v9 = vld [vmem:[#allocation4 + $0x2d4] sm:$0xf]  ;;  %v2542_v10 = vld [vmem:[#allocation4 + $0x2e4] sm:$0xf0] }
  0x49   :  { %1399 = vmatpush.bf16.msrb.mxu3 %v2701_v47  ;;  %v3154_v47 = vld [vmem:[#allocation4 + $0x464] sm:$0xf]  ;;  %v2545_v12 = vor.u32 %v3104_v9, %v2542_v10  ;;  %v2342_v19 = vld [vmem:[#allocation4 + $0x154] sm:$0xf0]  ;;  %v2522_v22 = vld [vmem:[#allocation4 + $0x2bc] sm:$0xf0] }
  0x4a   :  { %1361 = vmatpush.bf16.msrb.mxu0 %v2201_v46  ;;  %v2242_v46 = vld [vmem:[#allocation4 + $0x8c] sm:$0xf0]  ;;  %v2745_v53 = vor.u32 %v3154_v47, %v2742_v48  ;;  %v3139_v23 = vld [vmem:[#allocation4 + $0x3ec] sm:$0xf]  ;;  %v2682_v24 = vld [vmem:[#allocation4 + $0x3fc] sm:$0xf0] }
  0x4b   :  { %1374 = vmatpush.bf16.msrb.mxu1 %v2361_v51  ;;  %v2585_v51 = vor.u32 %v3114_v43, %v2582_v44  ;;  %v2245_v52 = vor.u32 %v3029_v42, %v2242_v46  ;;  %v2685_v26 = vor.u32 %v3139_v23, %v2682_v24  ;;  %v3134_v30 = vld [vmem:[#allocation4 + $0x3c4] sm:$0xf]  ;;  %v2662_v31 = vld [vmem:[#allocation4 + $0x3d4] sm:$0xf0]  ;;  %v3052_v34 = vld [vmem:[#allocation4 + $0x130] sm:$0xf0] }
  0x4c   :  { %1387 = vmatpush.bf16.msrb.mxu2 %v2521_v59  ;;  %v3149_v59 = vld [vmem:[#allocation4 + $0x43c] sm:$0xf]  ;;  %v2665_v32 = vor.u32 %v3134_v30, %v2662_v31  ;;  %v2488_v35 = vld [vmem:[#allocation4 + $0x260] sm:$0xf]  ;;  %v3092_v36 = vld [vmem:[#allocation4 + $0x270] sm:$0xf0] }
  0x4d   :  { %1400 = vmatpush.bf16.msrb.mxu3 %v2681_v63  ;;  %v2565_v63 = vor.u32 %v3109_v55, %v2562_v56  ;;  %v2725_v1 = vor.u32 %v3149_v59, %v2722_v60  ;;  %v2308_v42 = vld [vmem:[#allocation4 + $0xf8] sm:$0xf]  ;;  %v3047_v43 = vld [vmem:[#allocation4 + $0x108] sm:$0xf0]  ;;  %v2648_v48 = vld [vmem:[#allocation4 + $0x3a0] sm:$0xf] }
  0x4e   :  { %1362 = vmatpush.bf16.msrb.mxu0 %v2181_v62  ;;  %v2382_v62 = vld [vmem:[#allocation4 + $0x1a4] sm:$0xf0]  ;;  %v3087_v46 = vld [vmem:[#allocation4 + $0x248] sm:$0xf0]  ;;  %v2309_v47 = vor.u32 %v3047_v43, %v2308_v42  ;;  %v3132_v49 = vld [vmem:[#allocation4 + $0x3b0] sm:$0xf0] }
  0x4f   :  { %1375 = vmatpush.bf16.msrb.mxu1 %v2341_v5  ;;  %v2385_v2 = vor.u32 %v3064_v61, %v2382_v62  ;;  %v3059_v5 = vld [vmem:[#allocation4 + $0x16c] sm:$0xf]  ;;  %v2808_v50 = vld [vmem:[#allocation4 + $0x4e0] sm:$0xf]  ;;  %v3042_v54 = vld [vmem:[#allocation4 + $0xe0] sm:$0xf0]  ;;  %v2649_v58 = vor.u32 %v3132_v49, %v2648_v48 }
  0x50   :  { %1388 = vmatpush.bf16.msrb.mxu2 %v2501_v13  ;;  %v2702_v13 = vld [vmem:[#allocation4 + $0x424] sm:$0xf0]  ;;  %v2448_v55 = vld [vmem:[#allocation4 + $0x210] sm:$0xf]  ;;  %v3082_v56 = vld [vmem:[#allocation4 + $0x220] sm:$0xf0] }
  0x51   :  { %1401 = vmatpush.bf16.msrb.mxu3 %v2661_v14  ;;  %v2428_v9 = vld [vmem:[#allocation4 + $0x1e8] sm:$0xf]  ;;  %v3077_v10 = vld [vmem:[#allocation4 + $0x1f8] sm:$0xf0]  ;;  %v3022_v48 = vld [vmem:[#allocation4 + $0x40] sm:$0xf0] }
  0x52   :  { %1407 = vmatpush.bf16.msra.mxu0 %v2325_v6  ;;  %v2362_v6 = vld [vmem:[#allocation4 + $0x17c] sm:$0xf0]  ;;  %v2748_v31 = vld [vmem:[#allocation4 + $0x468] sm:$0xf]  ;;  %v2368_v49 = vld [vmem:[#allocation4 + $0x170] sm:$0xf] }
  0x53   :  { %1420 = vmatpush.bf16.msra.mxu1 %v2485_v11  ;;  %v2365_v8 = vor.u32 %v3059_v5, %v2362_v6  ;;  %v3144_v11 = vld [vmem:[#allocation4 + $0x414] sm:$0xf]  ;;  %v2449_v5 = vor.u32 %v3082_v56, %v2448_v55  ;;  %v3167_v6 = vld [vmem:[#allocation4 + $0x4c8] sm:$0xf0]  ;;  %v2708_v55 = vld [vmem:[#allocation4 + $0x418] sm:$0xf] }
  0x54   :  { %1433 = vmatpush.bf16.msra.mxu2 %v2645_v15  ;;  %v2705_v14 = vor.u32 %v3144_v11, %v2702_v13  ;;  %v3014_v15 = vld [vmem:[#allocation4 + $0x4] sm:$0xf] }
  0x55   :  { %1446 = vmatpush.bf16.msra.mxu3 %v2805_v17  ;;  %v3054_v17 = vld [vmem:[#allocation4 + $0x144] sm:$0xf] }
  0x56   :  { %1408 = vmatpush.bf16.msra.mxu0 %v2305_v16  ;;  %v2182_v16 = vld [vmem:[#allocation4 + $0x14] sm:$0xf0]  ;;  %v2345_v20 = vor.u32 %v3054_v17, %v2342_v19  ;;  %v2768_v17 = vld [vmem:[#allocation4 + $0x490] sm:$0xf]  ;;  %v2248_v19 = vld [vmem:[#allocation4 + $0x80] sm:$0xf] }
  0x57   :  { %1421 = vmatpush.bf16.msra.mxu1 %v2465_v21  ;;  %v2185_v18 = vor.u32 %v3014_v15, %v2182_v16  ;;  %v3099_v21 = vld [vmem:[#allocation4 + $0x2ac] sm:$0xf]  ;;  %v3122_v15 = vld [vmem:[#allocation4 + $0x360] sm:$0xf0]  ;;  %v2429_v16 = vor.u32 %v3077_v10, %v2428_v9 }
  0x58   :  { %1434 = vmatpush.bf16.msra.mxu2 %v2625_v27  ;;  %v2525_v25 = vor.u32 %v3099_v21, %v2522_v22  ;;  %v3094_v27 = vld [vmem:[#allocation4 + $0x284] sm:$0xf]  ;;  %v2408_v21 = vld [vmem:[#allocation4 + $0x1c0] sm:$0xf]  ;;  %v3072_v22 = vld [vmem:[#allocation4 + $0x1d0] sm:$0xf0] }
  0x59   :  { %1447 = vmatpush.bf16.msra.mxu3 %v2785_v29  ;;  %v2409_v30 = vor.u32 %v3072_v22, %v2408_v21  ;;  %v2508_v21 = vld [vmem:[#allocation4 + $0x288] sm:$0xf]  ;;  %v3097_v22 = vld [vmem:[#allocation4 + $0x298] sm:$0xf0] }
  0x5a   :  { %1409 = vmatpush.bf16.msra.mxu0 %v2285_v28  ;;  %v2502_v28 = vld [vmem:[#allocation4 + $0x294] sm:$0xf0] }
  0x5b   :  { %1422 = vmatpush.bf16.msra.mxu1 %v2445_v33  ;;  %v2505_v29 = vor.u32 %v3094_v27, %v2502_v28  ;;  %v2328_v33 = vld [vmem:[#allocation4 + $0x120] sm:$0xf]  ;;  %v2588_v27 = vld [vmem:[#allocation4 + $0x328] sm:$0xf]  ;;  %v3117_v28 = vld [vmem:[#allocation4 + $0x338] sm:$0xf0] }
  0x5c   :  { %1435 = vmatpush.bf16.msra.mxu2 %v2605_v39  ;;  %v2329_v38 = vor.u32 %v3052_v34, %v2328_v33  ;;  %v2228_v33 = vld [vmem:[#allocation4 + $0x58] sm:$0xf]  ;;  %v3027_v34 = vld [vmem:[#allocation4 + $0x68] sm:$0xf0] }
  0x5d   :  { %1448 = vmatpush.bf16.msra.mxu3 %v2765_v41  ;;  %v2489_v41 = vor.u32 %v3092_v36, %v2488_v35  ;;  %v2388_v35 = vld [vmem:[#allocation4 + $0x198] sm:$0xf]  ;;  %v3067_v36 = vld [vmem:[#allocation4 + $0x1a8] sm:$0xf0]  ;;  %v2229_v42 = vor.u32 %v3027_v34, %v2228_v33  ;;  %v2290_v33 = vld [vmem:[#allocation4 + $0xe4] sm:$0xf0] }
  0x5e   :  { %1410 = vmatpush.bf16.msra.mxu0 %v2265_v40  ;;  %v2389_v43 = vor.u32 %v3067_v36, %v2388_v35  ;;  %v3080_v34 = vld [vmem:[#allocation4 + $0x214] sm:$0xf]  ;;  %v2450_v35 = vld [vmem:[#allocation4 + $0x224] sm:$0xf0] }
  0x5f   :  { %1423 = vmatpush.bf16.msra.mxu1 %v2425_v45  ;;  %v2468_v45 = vld [vmem:[#allocation4 + $0x238] sm:$0xf] }
  0x60   :  { %1436 = vmatpush.bf16.msra.mxu2 %v2585_v51  ;;  %v2469_v51 = vor.u32 %v3087_v46, %v2468_v45  ;;  %v2728_v45 = vld [vmem:[#allocation4 + $0x440] sm:$0xf]  ;;  %v3152_v46 = vld [vmem:[#allocation4 + $0x450] sm:$0xf0] }
  0x61   :  { %1449 = vmatpush.bf16.msra.mxu3 %v2745_v53  ;;  %v2288_v53 = vld [vmem:[#allocation4 + $0xd0] sm:$0xf] }
  0x62   :  { %1411 = vmatpush.bf16.msra.mxu0 %v2245_v52  ;;  %v3172_v52 = vld [vmem:[#allocation4 + $0x4f0] sm:$0xf0] }
  0x63   :  { %1424 = vmatpush.bf16.msra.mxu1 %v2405_v57  ;;  %v2809_v62 = vor.u32 %v3172_v52, %v2808_v50  ;;  %v3062_v50 = vld [vmem:[#allocation4 + $0x180] sm:$0xf0]  ;;  %v2729_v52 = vor.u32 %v3152_v46, %v2728_v45  ;;  %v3165_v45 = vld [vmem:[#allocation4 + $0x4bc] sm:$0xf]  ;;  %v2790_v46 = vld [vmem:[#allocation4 + $0x4cc] sm:$0xf0] }
  0x64   :  { %1437 = vmatpush.bf16.msra.mxu2 %v2565_v63  ;;  %v2289_v63 = vor.u32 %v3042_v54, %v2288_v53  ;;  %v2548_v53 = vld [vmem:[#allocation4 + $0x2d8] sm:$0xf]  ;;  %v3107_v54 = vld [vmem:[#allocation4 + $0x2e8] sm:$0xf0] }
  0x65   :  { %1450 = vmatpush.bf16.msra.mxu3 %v2725_v1  ;;  %v3127_v1 = vld [vmem:[#allocation4 + $0x388] sm:$0xf0] }
  0x66   :  { %1412 = vmatpush.bf16.msra.mxu0 %v2225_v0  ;;  %v2628_v0 = vld [vmem:[#allocation4 + $0x378] sm:$0xf] }
  0x67   :  { %1425 = vmatpush.bf16.msra.mxu1 %v2385_v2  ;;  %v2788_v2 = vld [vmem:[#allocation4 + $0x4b8] sm:$0xf]  ;;  %v2629_v11 = vor.u32 %v3127_v1, %v2628_v0  ;;  %v3050_v0 = vld [vmem:[#allocation4 + $0x124] sm:$0xf]  ;;  %v2549_v1 = vor.u32 %v3107_v54, %v2548_v53  ;;  %v3120_v53 = vld [vmem:[#allocation4 + $0x354] sm:$0xf] }
  0x68   :  { %1438 = vmatpush.bf16.msra.mxu2 %v2545_v12  ;;  %v2789_v12 = vor.u32 %v3167_v6, %v2788_v2  ;;  %v2330_v2 = vld [vmem:[#allocation4 + $0x134] sm:$0xf0]  ;;  %v2610_v54 = vld [vmem:[#allocation4 + $0x364] sm:$0xf0] }
  0x69   :  { %1451 = vmatpush.bf16.msra.mxu3 %v2705_v14  ;;  %v2608_v14 = vld [vmem:[#allocation4 + $0x350] sm:$0xf] }
  0x6a   :  { %1413 = vmatpush.bf16.msra.mxu0 %v2205_v7  ;;  %v2268_v7 = vld [vmem:[#allocation4 + $0xa8] sm:$0xf]  ;;  %v2609_v24 = vor.u32 %v3122_v15, %v2608_v14  ;;  %v3045_v15 = vld [vmem:[#allocation4 + $0xfc] sm:$0xf] }
  0x6b   :  { %1426 = vmatpush.bf16.msra.mxu1 %v2365_v8  ;;  %v3037_v8 = vld [vmem:[#allocation4 + $0xb8] sm:$0xf0] }
  0x6c   :  { %1439 = vmatpush.bf16.msra.mxu2 %v2525_v25  ;;  %v2269_v13 = vor.u32 %v3037_v8, %v2268_v7  ;;  %v2528_v7 = vld [vmem:[#allocation4 + $0x2b0] sm:$0xf]  ;;  %v3102_v8 = vld [vmem:[#allocation4 + $0x2c0] sm:$0xf0] }
  0x6d   :  { %1452 = vmatpush.bf16.msra.mxu3 %v2685_v26 }
  0x6e   :  { %1414 = vmatpush.bf16.msra.mxu0 %v2185_v18  ;;  %v3162_v18 = vld [vmem:[#allocation4 + $0x4a0] sm:$0xf0] }
  0x6f   :  { %1427 = vmatpush.bf16.msra.mxu1 %v2345_v20  ;;  %v3032_v20 = vld [vmem:[#allocation4 + $0x90] sm:$0xf0]  ;;  %v2769_v26 = vor.u32 %v3162_v18, %v2768_v17  ;;  %v2310_v17 = vld [vmem:[#allocation4 + $0x10c] sm:$0xf0]  ;;  %v3085_v18 = vld [vmem:[#allocation4 + $0x23c] sm:$0xf] }
  0x70   :  { %1440 = vmatpush.bf16.msra.mxu2 %v2505_v29  ;;  %v2249_v29 = vor.u32 %v3032_v20, %v2248_v19  ;;  %v2470_v19 = vld [vmem:[#allocation4 + $0x24c] sm:$0xf0] }
  0x71   :  { %1453 = vmatpush.bf16.msra.mxu3 %v2665_v32  ;;  %v3157_v32 = vld [vmem:[#allocation4 + $0x478] sm:$0xf0] }
  0xae   :  { %v272_v37 = vpop.f32.mrf.mxu0 }
  0xaf   :  { %v3360_v39 = vpack.c.bf16 %v272_v37, %v272_v37  ;;  %v285_v40 = vpop.f32.mrf.mxu1  ;;  %v2589_v37 = vor.u32 %v3117_v28, %v2588_v27  ;;  %v2313_v27 = vor.u32 %v3045_v15, %v2310_v17  ;;  %v2473_v28 = vor.u32 %v3085_v18, %v2470_v19  ;;  %v3110_v15 = vld [vmem:[#allocation4 + $0x304] sm:$0xf] }
  0xb0   :  { %v3362_v44 = vpack.c.bf16 %v285_v40, %v285_v40  ;;  %v2568_v40 = vld [vmem:[#allocation4 + $0x300] sm:$0xf]  ;;  %v3150_v19 = vld [vmem:[#allocation4 + $0x444] sm:$0xf] }
  0xb1   :  { %1363 = vmatmul.bf16.vlgmr.msrb.gmra.mxu0 %v3360_v39 }
  0xb2   :  { %1376 = vmatmul.bf16.vlgmr.msrb.gmra.mxu1 %v3362_v44  ;;  %1459 = vmatpush.bf16.msrb.mxu0 %v2329_v38  ;;  %v2749_v38 = vor.u32 %v3157_v32, %v2748_v31  ;;  %v3040_v31 = vld [vmem:[#allocation4 + $0xd4] sm:$0xf]  ;;  %v2509_v32 = vor.u32 %v3097_v22, %v2508_v21  ;;  %v2210_v22 = vld [vmem:[#allocation4 + $0x44] sm:$0xf0] }
  0xb3   :  { %1472 = vmatpush.bf16.msrb.mxu1 %v2489_v41  ;;  %v3112_v41 = vld [vmem:[#allocation4 + $0x310] sm:$0xf0] }
  0xb4   :  { %v3020_v21 = vld [vmem:[#allocation4 + $0x34] sm:$0xf] }
  0xb6   :  { %v298_v57 = vpop.f32.mrf.mxu2  ;;  %1460 = vmatpush.bf16.msrb.mxu0 %v2309_v47  ;;  %v274_v61 = vpop.f32.mrf.mxu0  ;;  %v2208_v47 = vld [vmem:[#allocation4 + $0x30] sm:$0xf] }
  0xb7   :  { %v3366_v59 = vpack.c.bf16 %v298_v57, %v298_v57  ;;  %v311_v60 = vpop.f32.mrf.mxu3  ;;  %1473 = vmatpush.bf16.msrb.mxu1 %v2469_v51  ;;  %v287_v4 = vpop.f32.mrf.mxu1  ;;  %v2569_v51 = vor.u32 %v3112_v41, %v2568_v40  ;;  %v2209_v56 = vor.u32 %v3022_v48, %v2208_v47  ;;  %v2369_v57 = vor.u32 %v3062_v50, %v2368_v49  ;;  %v3017_v61 = vld [vmem:[#allocation4 + $0x18] sm:$0xf0]  ;;  %v2630_v41 = vld [vmem:[#allocation4 + $0x38c] sm:$0xf0]  ;;  %v3035_v47 = vld [vmem:[#allocation4 + $0xac] sm:$0xf] }
  0xb8   :  { %v3368_v3 = vpack.c.bf16 %v311_v60, %v311_v60  ;;  %v2188_v60 = vld [vmem:[#allocation4 + $0x8] sm:$0xf]  ;;  %v3090_v4 = vld [vmem:[#allocation4 + $0x264] sm:$0xf]  ;;  %v3125_v40 = vld [vmem:[#allocation4 + $0x37c] sm:$0xf] }
  0xb9   :  { %1389 = vmatmul.bf16.vlgmr.msrb.gmra.mxu2 %v3366_v59  ;;  %v2189_v9 = vor.u32 %v3017_v61, %v2188_v60  ;;  %v2270_v48 = vld [vmem:[#allocation4 + $0xbc] sm:$0xf0]  ;;  %v3075_v49 = vld [vmem:[#allocation4 + $0x1ec] sm:$0xf]  ;;  %v3030_v60 = vld [vmem:[#allocation4 + $0x84] sm:$0xf] }
  0xba   :  { %1402 = vmatmul.bf16.vlgmr.msrb.gmra.mxu3 %v3368_v3  ;;  %1485 = vmatpush.bf16.msrb.mxu2 %v2649_v58  ;;  %v3147_v58 = vld [vmem:[#allocation4 + $0x428] sm:$0xf0]  ;;  %v2430_v50 = vld [vmem:[#allocation4 + $0x1fc] sm:$0xf0]  ;;  %v2250_v61 = vld [vmem:[#allocation4 + $0x94] sm:$0xf0] }
  0xbb   :  { %1498 = vmatpush.bf16.msrb.mxu3 %v2809_v62  ;;  %1461 = vmatpush.bf16.msrb.mxu0 %v2289_v63  ;;  %v2348_v62 = vld [vmem:[#allocation4 + $0x148] sm:$0xf]  ;;  %v3057_v63 = vld [vmem:[#allocation4 + $0x158] sm:$0xf0]  ;;  %v2709_v6 = vor.u32 %v3147_v58, %v2708_v55  ;;  %v2273_v55 = vor.u32 %v3035_v47, %v2270_v48 }
  0xbc   :  { %1474 = vmatpush.bf16.msrb.mxu1 %v2449_v5  ;;  %v2490_v5 = vld [vmem:[#allocation4 + $0x274] sm:$0xf0]  ;;  %v2349_v10 = vor.u32 %v3057_v63, %v2348_v62  ;;  %v2770_v58 = vld [vmem:[#allocation4 + $0x4a4] sm:$0xf0]  ;;  %v3070_v62 = vld [vmem:[#allocation4 + $0x1c4] sm:$0xf] }
  0xbd   :  { %v2493_v14 = vor.u32 %v3090_v4, %v2490_v5  ;;  %v2410_v63 = vld [vmem:[#allocation4 + $0x1d4] sm:$0xf0]  ;;  %v2590_v4 = vld [vmem:[#allocation4 + $0x33c] sm:$0xf0]  ;;  %v2253_v5 = vor.u32 %v3030_v60, %v2250_v61  ;;  %v3095_v60 = vld [vmem:[#allocation4 + $0x28c] sm:$0xf] }
  0xbe   :  { %1486 = vmatpush.bf16.msrb.mxu2 %v2629_v11  ;;  %v300_v23 = vpop.f32.mrf.mxu2  ;;  %v2688_v11 = vld [vmem:[#allocation4 + $0x3f0] sm:$0xf]  ;;  %v2510_v61 = vld [vmem:[#allocation4 + $0x29c] sm:$0xf0] }
  0xbf   :  { %1499 = vmatpush.bf16.msrb.mxu3 %v2789_v12  ;;  %v313_v25 = vpop.f32.mrf.mxu3  ;;  %1462 = vmatpush.bf16.msrb.mxu0 %v2269_v13  ;;  %v3142_v12 = vld [vmem:[#allocation4 + $0x400] sm:$0xf0]  ;;  %v2333_v13 = vor.u32 %v3050_v0, %v2330_v2  ;;  %v2668_v23 = vld [vmem:[#allocation4 + $0x3c8] sm:$0xf]  ;;  %v2613_v0 = vor.u32 %v3120_v53, %v2610_v54  ;;  %v3115_v2 = vld [vmem:[#allocation4 + $0x32c] sm:$0xf] }
  0xc0   :  { %1475 = vmatpush.bf16.msrb.mxu1 %v2429_v16  ;;  %v2529_v16 = vor.u32 %v3102_v8, %v2528_v7  ;;  %v2689_v20 = vor.u32 %v3142_v12, %v2688_v11  ;;  %v3130_v25 = vld [vmem:[#allocation4 + $0x3a4] sm:$0xf]  ;;  %v3155_v7 = vld [vmem:[#allocation4 + $0x46c] sm:$0xf]  ;;  %v2750_v8 = vld [vmem:[#allocation4 + $0x47c] sm:$0xf0] }
  0xc1   :  { %1415 = vmatmul.bf16.vlgmr.msra.gmra.mxu0 %v3360_v39  ;;  %v3065_v11 = vld [vmem:[#allocation4 + $0x19c] sm:$0xf]  ;;  %v2390_v12 = vld [vmem:[#allocation4 + $0x1ac] sm:$0xf0]  ;;  %v2316_v53 = vld [vmem:[#allocation4 + $0x100] sm:$0xf] }
  0xc2   :  { %1487 = vmatpush.bf16.msrb.mxu2 %v2609_v24  ;;  %1428 = vmatmul.bf16.vlgmr.msra.gmra.mxu1 %v3362_v44  ;;  %v3137_v24 = vld [vmem:[#allocation4 + $0x3d8] sm:$0xf0]  ;;  %v2393_v18 = vor.u32 %v3065_v11, %v2390_v12  ;;  %v2456_v12 = vld [vmem:[#allocation4 + $0x218] sm:$0xf] }
  0xc3   :  { %1500 = vmatpush.bf16.msrb.mxu3 %v2769_v26  ;;  %1463 = vmatpush.bf16.msrb.mxu0 %v2249_v29  ;;  %v2650_v26 = vld [vmem:[#allocation4 + $0x3b4] sm:$0xf0]  ;;  %v3170_v29 = vld [vmem:[#allocation4 + $0x4e4] sm:$0xf]  ;;  %v2669_v36 = vor.u32 %v3137_v24, %v2668_v23  ;;  %v3060_v23 = vld [vmem:[#allocation4 + $0x174] sm:$0xf] }
  0xc4   :  { %1476 = vmatpush.bf16.msrb.mxu1 %v2409_v30  ;;  %v2810_v30 = vld [vmem:[#allocation4 + $0x4f4] sm:$0xf0]  ;;  %v2370_v24 = vld [vmem:[#allocation4 + $0x184] sm:$0xf0] }
  0xc6   :  { %1488 = vmatpush.bf16.msrb.mxu2 %v2589_v37  ;;  %v2653_v37 = vor.u32 %v3130_v25, %v2650_v26 }
  0xc7   :  { %1501 = vmatpush.bf16.msrb.mxu3 %v2749_v38  ;;  %1464 = vmatpush.bf16.msrb.mxu0 %v2229_v42  ;;  %v2813_v38 = vor.u32 %v3170_v29, %v2810_v30  ;;  %v2293_v42 = vor.u32 %v3040_v31, %v2290_v33  ;;  %v3145_v29 = vld [vmem:[#allocation4 + $0x41c] sm:$0xf]  ;;  %v2213_v30 = vor.u32 %v3020_v21, %v2210_v22  ;;  %v3015_v33 = vld [vmem:[#allocation4 + $0xc] sm:$0xf]  ;;  %v2276_v21 = vld [vmem:[#allocation4 + $0xb0] sm:$0xf] }
  0xc8   :  { %1477 = vmatpush.bf16.msrb.mxu1 %v2389_v43  ;;  %v2453_v43 = vor.u32 %v3080_v34, %v2450_v35  ;;  %v2373_v31 = vor.u32 %v3060_v23, %v2370_v24  ;;  %v2190_v34 = vld [vmem:[#allocation4 + $0x1c] sm:$0xf0]  ;;  %v3055_v35 = vld [vmem:[#allocation4 + $0x14c] sm:$0xf]  ;;  %v3038_v22 = vld [vmem:[#allocation4 + $0xc0] sm:$0xf0] }
  0xc9   :  { %1441 = vmatmul.bf16.vlgmr.msra.gmra.mxu2 %v3366_v59  ;;  %v2193_v47 = vor.u32 %v3015_v33, %v2190_v34  ;;  %v2436_v24 = vld [vmem:[#allocation4 + $0x1f0] sm:$0xf]  ;;  %v2256_v33 = vld [vmem:[#allocation4 + $0x88] sm:$0xf]  ;;  %v3033_v34 = vld [vmem:[#allocation4 + $0x98] sm:$0xf0] }
  0xca   :  { %1454 = vmatmul.bf16.vlgmr.msra.gmra.mxu3 %v3368_v3  ;;  %1489 = vmatpush.bf16.msrb.mxu2 %v2569_v51  ;;  %v2633_v51 = vor.u32 %v3125_v40, %v2630_v41  ;;  %v3053_v40 = vld [vmem:[#allocation4 + $0x138] sm:$0xf0]  ;;  %v2496_v41 = vld [vmem:[#allocation4 + $0x268] sm:$0xf] }
  0xcb   :  { %1502 = vmatpush.bf16.msrb.mxu3 %v2729_v52  ;;  %1465 = vmatpush.bf16.msrb.mxu0 %v2209_v56  ;;  %v2793_v52 = vor.u32 %v3165_v45, %v2790_v46  ;;  %v2433_v56 = vor.u32 %v3075_v49, %v2430_v50  ;;  %v3100_v45 = vld [vmem:[#allocation4 + $0x2b4] sm:$0xf]  ;;  %v2530_v46 = vld [vmem:[#allocation4 + $0x2c4] sm:$0xf0] }
  0xcc   :  { %1478 = vmatpush.bf16.msrb.mxu1 %v2369_v57  ;;  %v3160_v57 = vld [vmem:[#allocation4 + $0x494] sm:$0xf]  ;;  %v2690_v50 = vld [vmem:[#allocation4 + $0x404] sm:$0xf0]  ;;  %v2533_v54 = vor.u32 %v3100_v45, %v2530_v46  ;;  %v3158_v45 = vld [vmem:[#allocation4 + $0x480] sm:$0xf0] }
  0xcd   :  { %v3140_v49 = vld [vmem:[#allocation4 + $0x3f4] sm:$0xf] }
  0xce   :  { %1490 = vmatpush.bf16.msrb.mxu2 %v2549_v1  ;;  %v2773_v1 = vor.u32 %v3160_v57, %v2770_v58  ;;  %v3088_v57 = vld [vmem:[#allocation4 + $0x250] sm:$0xf0]  ;;  %v2693_v58 = vor.u32 %v3140_v49, %v2690_v50  ;;  %v2396_v50 = vld [vmem:[#allocation4 + $0x1a0] sm:$0xf] }
  0xcf   :  { %1503 = vmatpush.bf16.msrb.mxu3 %v2709_v6  ;;  %1466 = vmatpush.bf16.msrb.mxu0 %v2189_v9  ;;  %v2413_v6 = vor.u32 %v3070_v62, %v2410_v63  ;;  %v3025_v9 = vld [vmem:[#allocation4 + $0x5c] sm:$0xf]  ;;  %v3135_v62 = vld [vmem:[#allocation4 + $0x3cc] sm:$0xf]  ;;  %v2670_v63 = vld [vmem:[#allocation4 + $0x3dc] sm:$0xf0] }
  0xd0   :  { %1479 = vmatpush.bf16.msrb.mxu1 %v2349_v10  ;;  %v2230_v10 = vld [vmem:[#allocation4 + $0x6c] sm:$0xf0] }
  0xd1   :  { %v2233_v17 = vor.u32 %v3025_v9, %v2230_v10  ;;  %v3043_v9 = vld [vmem:[#allocation4 + $0xe8] sm:$0xf0]  ;;  %v2673_v10 = vor.u32 %v3135_v62, %v2670_v63  ;;  %v2376_v63 = vld [vmem:[#allocation4 + $0x178] sm:$0xf] }
  0xd2   :  { %1491 = vmatpush.bf16.msrb.mxu2 %v2529_v16  ;;  %1467 = vmatmul.bf16.vlgmr.msrb.gmra.mxu0 %v3360_v39  ;;  %v2570_v16 = vld [vmem:[#allocation4 + $0x314] sm:$0xf0] }
  0xd3   :  { %1511 = vmatpush.bf16.msra.mxu0 %v2333_v13  ;;  %1504 = vmatpush.bf16.msrb.mxu3 %v2689_v20  ;;  %v2593_v13 = vor.u32 %v3115_v2, %v2590_v4  ;;  %v2730_v20 = vld [vmem:[#allocation4 + $0x454] sm:$0xf0]  ;;  %v2573_v25 = vor.u32 %v3110_v15, %v2570_v16  ;;  %v2636_v15 = vld [vmem:[#allocation4 + $0x380] sm:$0xf]  ;;  %v3128_v16 = vld [vmem:[#allocation4 + $0x390] sm:$0xf0] }
  0xd4   :  { %1524 = vmatpush.bf16.msra.mxu1 %v2493_v14  ;;  %v2753_v14 = vor.u32 %v3155_v7, %v2750_v8  ;;  %v2733_v26 = vor.u32 %v3150_v19, %v2730_v20  ;;  %v2513_v7 = vor.u32 %v3095_v60, %v2510_v61  ;;  %v2296_v8 = vld [vmem:[#allocation4 + $0xd8] sm:$0xf]  ;;  %v3168_v19 = vld [vmem:[#allocation4 + $0x4d0] sm:$0xf0]  ;;  %v2637_v23 = vor.u32 %v3128_v16, %v2636_v15  ;;  %v3023_v61 = vld [vmem:[#allocation4 + $0x48] sm:$0xf0] }
  0xd5   :  { %1480 = vmatmul.bf16.vlgmr.msrb.gmra.mxu1 %v3362_v44  ;;  %v2216_v60 = vld [vmem:[#allocation4 + $0x38] sm:$0xf]  ;;  %v3103_v16 = vld [vmem:[#allocation4 + $0x2c8] sm:$0xf0] }
  0xd6   :  { %1492 = vmatpush.bf16.msrb.mxu2 %v2509_v32  ;;  %v2710_v32 = vld [vmem:[#allocation4 + $0x42c] sm:$0xf0]  ;;  %v2536_v15 = vld [vmem:[#allocation4 + $0x2b8] sm:$0xf] }
  0xd7   :  { %1512 = vmatpush.bf16.msra.mxu0 %v2313_v27  ;;  %1505 = vmatpush.bf16.msrb.mxu3 %v2669_v36  ;;  %v3105_v27 = vld [vmem:[#allocation4 + $0x2dc] sm:$0xf]  ;;  %v2350_v36 = vld [vmem:[#allocation4 + $0x15c] sm:$0xf0] }
  0xd8   :  { %1525 = vmatpush.bf16.msra.mxu1 %v2473_v28  ;;  %v2550_v28 = vld [vmem:[#allocation4 + $0x2ec] sm:$0xf0]  ;;  %v2353_v48 = vor.u32 %v3055_v35, %v2350_v36  ;;  %v2416_v36 = vld [vmem:[#allocation4 + $0x1c8] sm:$0xf] }
  0xd9   :  { %1493 = vmatmul.bf16.vlgmr.msrb.gmra.mxu2 %v3366_v59 }
  0xda   :  { %1537 = vmatpush.bf16.msra.mxu2 %v2653_v37  ;;  %1506 = vmatmul.bf16.vlgmr.msrb.gmra.mxu3 %v3368_v3  ;;  %v2336_v37 = vld [vmem:[#allocation4 + $0x128] sm:$0xf] }
  0xdb   :  { %1550 = vmatpush.bf16.msra.mxu3 %v2813_v38  ;;  %1513 = vmatpush.bf16.msra.mxu0 %v2293_v42  ;;  %v2553_v38 = vor.u32 %v3105_v27, %v2550_v28  ;;  %v3093_v42 = vld [vmem:[#allocation4 + $0x278] sm:$0xf0]  ;;  %v2616_v27 = vld [vmem:[#allocation4 + $0x358] sm:$0xf]  ;;  %v3123_v28 = vld [vmem:[#allocation4 + $0x368] sm:$0xf0] }
  0xdc   :  { %1526 = vmatpush.bf16.msra.mxu1 %v2453_v43  ;;  %v2713_v43 = vor.u32 %v3145_v29, %v2710_v32  ;;  %v2277_v29 = vor.u32 %v3038_v22, %v2276_v21  ;;  %v2617_v35 = vor.u32 %v3123_v28, %v2616_v27  ;;  %v2537_v21 = vor.u32 %v3103_v16, %v2536_v15  ;;  %v3202_v15 = vld [vmem:[#allocation6 + $0xe0] sm:$0xff] }
  0xde   :  { %1538 = vmatpush.bf16.msra.mxu2 %v2633_v51  ;;  %v2337_v51 = vor.u32 %v3053_v40, %v2336_v37  ;;  %v3073_v37 = vld [vmem:[#allocation4 + $0x1d8] sm:$0xf0]  ;;  %v2596_v40 = vld [vmem:[#allocation4 + $0x330] sm:$0xf] }
  0xdf   :  { %1551 = vmatpush.bf16.msra.mxu3 %v2793_v52  ;;  %1514 = vmatpush.bf16.msra.mxu0 %v2273_v55  ;;  %v2497_v52 = vor.u32 %v3093_v42, %v2496_v41  ;;  %v3048_v55 = vld [vmem:[#allocation4 + $0x110] sm:$0xf0]  ;;  %v3118_v41 = vld [vmem:[#allocation4 + $0x340] sm:$0xf0]  ;;  %v2257_v42 = vor.u32 %v3033_v34, %v2256_v33  ;;  %v2417_v46 = vor.u32 %v3073_v37, %v2416_v36  ;;  %v3187_v34 = vld [vmem:[#allocation6 + $0x68] sm:$0xff] }
  0xe0   :  { %1527 = vmatpush.bf16.msra.mxu1 %v2433_v56  ;;  %v2476_v56 = vld [vmem:[#allocation4 + $0x240] sm:$0xf]  ;;  %v2317_v2 = vor.u32 %v3048_v55, %v2316_v53  ;;  %v2597_v49 = vor.u32 %v3118_v41, %v2596_v40  ;;  %v2576_v53 = vld [vmem:[#allocation4 + $0x308] sm:$0xf]  ;;  %v3188_v33 = vld [vmem:[#allocation6 + $0x70] sm:$0xff] }
  0xe1   :  { %v2477_v4 = vor.u32 %v3088_v57, %v2476_v56  ;;  %v2736_v56 = vld [vmem:[#allocation4 + $0x448] sm:$0xf]  ;;  %v3153_v57 = vld [vmem:[#allocation4 + $0x458] sm:$0xf0]  ;;  %v3184_v37 = vld [vmem:[#allocation6 + $0x50] sm:$0xff] }
  0xe2   :  { %1539 = vmatpush.bf16.msra.mxu2 %v2613_v0  ;;  %v2656_v0 = vld [vmem:[#allocation4 + $0x3a8] sm:$0xf]  ;;  %v3185_v36 = vld [vmem:[#allocation6 + $0x58] sm:$0xff]  ;;  %v3174_v41 = vld [vmem:[#allocation6] sm:$0xff] }
  0xe3   :  { %1552 = vmatpush.bf16.msra.mxu3 %v2773_v1  ;;  %1515 = vmatpush.bf16.msra.mxu0 %v2253_v5  ;;  %v3133_v1 = vld [vmem:[#allocation4 + $0x3b8] sm:$0xf0]  ;;  %v2816_v5 = vld [vmem:[#allocation4 + $0x4e8] sm:$0xf] }
  0xe4   :  { %1528 = vmatpush.bf16.msra.mxu1 %v2413_v6  ;;  %v3173_v6 = vld [vmem:[#allocation4 + $0x4f8] sm:$0xf0]  ;;  %v2657_v11 = vor.u32 %v3133_v1, %v2656_v0  ;;  %v3063_v0 = vld [vmem:[#allocation4 + $0x188] sm:$0xf0]  ;;  %v2737_v1 = vor.u32 %v3153_v57, %v2736_v56  ;;  %v3196_v57 = vld [vmem:[#allocation6 + $0xb0] sm:$0xff] }
  0xe6   :  { %1540 = vmatpush.bf16.msra.mxu2 %v2593_v13  ;;  %v3083_v13 = vld [vmem:[#allocation4 + $0x228] sm:$0xf0] }
  0xe7   :  { %1553 = vmatpush.bf16.msra.mxu3 %v2753_v14  ;;  %1516 = vmatpush.bf16.msra.mxu0 %v2233_v17  ;;  %v2817_v14 = vor.u32 %v3173_v6, %v2816_v5  ;;  %v2297_v17 = vor.u32 %v3043_v9, %v2296_v8  ;;  %v2457_v20 = vor.u32 %v3083_v13, %v2456_v12  ;;  %v2716_v6 = vld [vmem:[#allocation4 + $0x420] sm:$0xf]  ;;  %v2196_v9 = vld [vmem:[#allocation4 + $0x10] sm:$0xf]  ;;  %v3058_v13 = vld [vmem:[#allocation4 + $0x160] sm:$0xf0] }
  0xe8   :  { %1529 = vmatpush.bf16.msra.mxu1 %v2393_v18  ;;  %v2796_v18 = vld [vmem:[#allocation4 + $0x4c0] sm:$0xf]  ;;  %v2217_v5 = vor.u32 %v3023_v61, %v2216_v60  ;;  %v2377_v8 = vor.u32 %v3063_v0, %v2376_v63  ;;  %v2356_v12 = vld [vmem:[#allocation4 + $0x150] sm:$0xf]  ;;  %v3195_v61 = vld [vmem:[#allocation6 + $0xa8] sm:$0xff] }
  0xea   :  { %1541 = vmatpush.bf16.msra.mxu2 %v2573_v25  ;;  %v3078_v25 = vld [vmem:[#allocation4 + $0x200] sm:$0xf0] }
  0xeb   :  { %1554 = vmatpush.bf16.msra.mxu3 %v2733_v26  ;;  %1517 = vmatpush.bf16.msra.mxu0 %v2213_v30  ;;  %v2797_v26 = vor.u32 %v3168_v19, %v2796_v18  ;;  %v2776_v30 = vld [vmem:[#allocation4 + $0x498] sm:$0xf]  ;;  %v2437_v32 = vor.u32 %v3078_v25, %v2436_v24  ;;  %v3143_v19 = vld [vmem:[#allocation4 + $0x408] sm:$0xf0]  ;;  %v3098_v24 = vld [vmem:[#allocation4 + $0x2a0] sm:$0xf0] }
  0xec   :  { %1530 = vmatpush.bf16.msra.mxu1 %v2373_v31  ;;  %v3163_v31 = vld [vmem:[#allocation4 + $0x4a8] sm:$0xf0]  ;;  %v2696_v18 = vld [vmem:[#allocation4 + $0x3f8] sm:$0xf]  ;;  %v2676_v25 = vld [vmem:[#allocation4 + $0x3d0] sm:$0xf] }
  0xed   :  { %v2697_v22 = vor.u32 %v3143_v19, %v2696_v18 }
  0xee   :  { %1542 = vmatpush.bf16.msra.mxu2 %v2553_v38  ;;  %v2777_v38 = vor.u32 %v3163_v31, %v2776_v30  ;;  %v3180_v30 = vld [vmem:[#allocation6 + $0x30] sm:$0xff]  ;;  %v3189_v31 = vld [vmem:[#allocation6 + $0x78] sm:$0xff] }
  0xef   :  { %1555 = vmatpush.bf16.msra.mxu3 %v2713_v43  ;;  %1518 = vmatpush.bf16.msra.mxu0 %v2193_v47  ;;  %v2756_v43 = vld [vmem:[#allocation4 + $0x470] sm:$0xf]  ;;  %v2236_v47 = vld [vmem:[#allocation4 + $0x60] sm:$0xf] }
  0xf0   :  { %1531 = vmatpush.bf16.msra.mxu1 %v2353_v48  ;;  %v3028_v48 = vld [vmem:[#allocation4 + $0x70] sm:$0xf0] }
  0xf1   :  { %v2237_v55 = vor.u32 %v3028_v48, %v2236_v47  ;;  %v3391_v47 = vld [vmem:[%s3431_s3] sm:$0x1f] }
  0xf2   :  { %1543 = vmatpush.bf16.msra.mxu2 %v2533_v54  ;;  %1519 = vmatmul.bf16.vlgmr.msra.gmra.mxu0 %v3360_v39  ;;  %v3113_v54 = vld [vmem:[#allocation4 + $0x318] sm:$0xf0] }
  0xf3   :  { %1563 = vmatpush.bf16.msrb.mxu0 %v2337_v51  ;;  %1556 = vmatpush.bf16.msra.mxu3 %v2693_v58  ;;  %v3068_v51 = vld [vmem:[#allocation4 + $0x1b0] sm:$0xf0]  ;;  %v2577_v62 = vor.u32 %v3113_v54, %v2576_v53  ;;  %v3197_v53 = vld [vmem:[#allocation6 + $0xb8] sm:$0xff] }
  0xf4   :  { %1576 = vmatpush.bf16.msrb.mxu1 %v2497_v52  ;;  %v2757_v52 = vor.u32 %v3158_v45, %v2756_v43  ;;  %v2397_v58 = vor.u32 %v3068_v51, %v2396_v50  ;;  %v3182_v43 = vld [vmem:[#allocation6 + $0x40] sm:$0xff]  ;;  %v513_v50 = vperm.slane %v3391_v47, 0 }
  0xf5   :  { %1532 = vmatmul.bf16.vlgmr.msra.gmra.mxu1 %v3362_v44 }
  0xf6   :  { %1544 = vmatpush.bf16.msra.mxu2 %v2513_v7  ;;  %v3148_v7 = vld [vmem:[#allocation4 + $0x430] sm:$0xf0] }
  0xf7   :  { %1564 = vmatpush.bf16.msrb.mxu0 %v2317_v2  ;;  %1557 = vmatpush.bf16.msra.mxu3 %v2673_v10  ;;  %v2556_v2 = vld [vmem:[#allocation4 + $0x2e0] sm:$0xf]  ;;  %v3018_v10 = vld [vmem:[#allocation4 + $0x20] sm:$0xf0] }
  0xf8   :  { %1577 = vmatpush.bf16.msrb.mxu1 %v2477_v4  ;;  %v3108_v4 = vld [vmem:[#allocation4 + $0x2f0] sm:$0xf0] }
  0xf9   :  { %1545 = vmatmul.bf16.vlgmr.msra.gmra.mxu2 %v3366_v59 }
  0xfa   :  { %1589 = vmatpush.bf16.msrb.mxu2 %v2657_v11  ;;  %1558 = vmatmul.bf16.vlgmr.msra.gmra.mxu3 %v3368_v3  ;;  %v2557_v11 = vor.u32 %v3108_v4, %v2556_v2 }
  0xfb   :  { %1602 = vmatpush.bf16.msrb.mxu3 %v2817_v14  ;;  %1565 = vmatpush.bf16.msrb.mxu0 %v2297_v17  ;;  %v2717_v14 = vor.u32 %v3148_v7, %v2716_v6  ;;  %v2197_v17 = vor.u32 %v3018_v10, %v2196_v9  ;;  %v3194_v7 = vld [vmem:[#allocation6 + $0xa0] sm:$0xff] }
  0xfc   :  { %1578 = vmatpush.bf16.msrb.mxu1 %v2457_v20  ;;  %v2357_v20 = vor.u32 %v3058_v13, %v2356_v12 }
  0xfe   :  { %1590 = vmatpush.bf16.msrb.mxu2 %v2637_v23  ;;  %v2516_v23 = vld [vmem:[#allocation4 + $0x290] sm:$0xf] }
  0xff   :  { %1603 = vmatpush.bf16.msrb.mxu3 %v2797_v26  ;;  %1566 = vmatpush.bf16.msrb.mxu0 %v2277_v29  ;;  %v3138_v26 = vld [vmem:[#allocation4 + $0x3e0] sm:$0xf0]  ;;  %v2517_v27 = vor.u32 %v3098_v24, %v2516_v23  ;;  %v3181_v29 = vld [vmem:[#allocation6 + $0x38] sm:$0xff] }
 0x100   :  { %1579 = vmatpush.bf16.msrb.mxu1 %v2437_v32  ;;  %v2677_v28 = vor.u32 %v3138_v26, %v2676_v25  ;;  %v3179_v32 = vld [vmem:[#allocation6 + $0x28] sm:$0xff]  ;;  %v3200_v26 = vld [vmem:[#allocation6 + $0xd0] sm:$0xff] }
 0x101   :  { %v3191_v25 = vld [vmem:[#allocation6 + $0x88] sm:$0xff] }
 0x102   :  { %1591 = vmatpush.bf16.msrb.mxu2 %v2617_v35  ;;  %v3186_v35 = vld [vmem:[#allocation6 + $0x60] sm:$0xff] }
 0x103   :  { %1604 = vmatpush.bf16.msrb.mxu3 %v2777_v38  ;;  %1567 = vmatpush.bf16.msrb.mxu0 %v2257_v42  ;;  %v3183_v42 = vld [vmem:[#allocation6 + $0x48] sm:$0xff] }
 0x104   :  { %1580 = vmatpush.bf16.msrb.mxu1 %v2417_v46 }
 0x106   :  { %1592 = vmatpush.bf16.msrb.mxu2 %v2597_v49 }
 0x107   :  { %1605 = vmatpush.bf16.msrb.mxu3 %v2757_v52  ;;  %1568 = vmatpush.bf16.msrb.mxu0 %v2237_v55  ;;  %v514_v55 = vperm.slane %v3391_v47, 1 }
 0x108   :  { %1581 = vmatpush.bf16.msrb.mxu1 %v2397_v58  ;;  %v3205_v58 = vld [vmem:[#allocation6 + $0xf8] sm:$0xff] }
 0x10a   :  { %1593 = vmatpush.bf16.msrb.mxu2 %v2577_v62  ;;  %v3204_v62 = vld [vmem:[#allocation6 + $0xf0] sm:$0xff] }
 0x10b   :  { %1606 = vmatpush.bf16.msrb.mxu3 %v2737_v1  ;;  %1569 = vmatpush.bf16.msrb.mxu0 %v2217_v5 }
 0x10c   :  { %1582 = vmatpush.bf16.msrb.mxu1 %v2377_v8  ;;  %v3203_v8 = vld [vmem:[#allocation6 + $0xe8] sm:$0xff] }
 0x10e   :  { %1594 = vmatpush.bf16.msrb.mxu2 %v2557_v11 }
 0x10f   :  { %1607 = vmatpush.bf16.msrb.mxu3 %v2717_v14  ;;  %1570 = vmatpush.bf16.msrb.mxu0 %v2197_v17  ;;  %v3193_v14 = vld [vmem:[#allocation6 + $0x98] sm:$0xff] }
 0x110   :  { %1583 = vmatpush.bf16.msrb.mxu1 %v2357_v20  ;;  %v3192_v20 = vld [vmem:[#allocation6 + $0x90] sm:$0xff] }
 0x112   :  { %1595 = vmatpush.bf16.msrb.mxu2 %v2537_v21  ;;  %1571 = vmatmul.bf16.vlgmr.msrb.gmra.mxu0 %v3360_v39  ;;  %v3178_v39 = vld [vmem:[#allocation6 + $0x20] sm:$0xff]  ;;  %v3201_v21 = vld [vmem:[#allocation6 + $0xd8] sm:$0xff] }
 0x113   :  { %1608 = vmatpush.bf16.msrb.mxu3 %v2697_v22  ;;  %1584 = vmatmul.bf16.vlgmr.msrb.gmra.mxu1 %v3362_v44  ;;  %v3177_v44 = vld [vmem:[#allocation6 + $0x18] sm:$0xff] }
 0x114   :  { %1686 = vmatpush.bf16.msra.mxu0 %v3181_v29  ;;  %1774 = vmatpush.bf16.msra.mxu1 %v3189_v31  ;;  %v3199_v29 = vld [vmem:[#allocation6 + $0xc8] sm:$0xff] }
 0x116   :  { %1596 = vmatpush.bf16.msrb.mxu2 %v2517_v27 }
 0x117   :  { %1609 = vmatpush.bf16.msrb.mxu3 %v2677_v28  ;;  %v3190_v28 = vld [vmem:[#allocation6 + $0x80] sm:$0xff] }
 0x118   :  { %1687 = vmatpush.bf16.msra.mxu0 %v3180_v30  ;;  %1775 = vmatpush.bf16.msra.mxu1 %v3188_v33  ;;  %v3198_v33 = vld [vmem:[#allocation6 + $0xc0] sm:$0xff] }
 0x119   :  { %1597 = vmatmul.bf16.vlgmr.msrb.gmra.mxu2 %v3366_v59  ;;  %v3176_v59 = vld [vmem:[#allocation6 + $0x10] sm:$0xff] }
 0x11a   :  { %1610 = vmatmul.bf16.vlgmr.msrb.gmra.mxu3 %v3368_v3  ;;  %v3175_v3 = vld [vmem:[#allocation6 + $0x8] sm:$0xff]  ;;  %1858 = vmatpush.bf16.msra.mxu2 %v3197_v53  ;;  %v3206_v53 = vld [vmem:[#allocation6 + $0x100] sm:$0xff] }
 0x11b   :  { %1946 = vmatpush.bf16.msra.mxu3 %v3205_v58 }
 0x11c   :  { %1688 = vmatpush.bf16.msra.mxu0 %v3179_v32  ;;  %1776 = vmatpush.bf16.msra.mxu1 %v3187_v34  ;;  %v3213_v32 = vld [vmem:[#allocation6 + $0x138] sm:$0xff]  ;;  %v3211_v34 = vld [vmem:[#allocation6 + $0x128] sm:$0xff] }
 0x11e   :  { %1859 = vmatpush.bf16.msra.mxu2 %v3196_v57 }
 0x11f   :  { %1947 = vmatpush.bf16.msra.mxu3 %v3204_v62 }
 0x120   :  { %1689 = vmatpush.bf16.msra.mxu0 %v3178_v39  ;;  %1777 = vmatpush.bf16.msra.mxu1 %v3186_v35  ;;  %v3212_v39 = vld [vmem:[#allocation6 + $0x130] sm:$0xff] }
 0x122   :  { %1860 = vmatpush.bf16.msra.mxu2 %v3195_v61 }
 0x123   :  { %1948 = vmatpush.bf16.msra.mxu3 %v3203_v8 }
 0x124   :  { %1690 = vmatpush.bf16.msra.mxu0 %v3177_v44  ;;  %1778 = vmatpush.bf16.msra.mxu1 %v3185_v36 }
 0x126   :  { %1861 = vmatpush.bf16.msra.mxu2 %v3194_v7 }
 0x127   :  { %1949 = vmatpush.bf16.msra.mxu3 %v3202_v15  ;;  %v3223_v15 = vld [vmem:[%s3433_s5] ss:$0 sm:$0xff] }
 0x128   :  { %1691 = vmatpush.bf16.msra.mxu0 %v3176_v59  ;;  %1779 = vmatpush.bf16.msra.mxu1 %v3184_v37  ;;  %v3210_v59 = vld [vmem:[#allocation6 + $0x120] sm:$0xff]  ;;  %v515_v37 = vperm.slane %v3391_v47, 2 }
 0x12a   :  { %1862 = vmatpush.bf16.msra.mxu2 %v3193_v14 }
 0x12b   :  { %1950 = vmatpush.bf16.msra.mxu3 %v3201_v21 }
 0x12c   :  { %1692 = vmatpush.bf16.msra.mxu0 %v3175_v3  ;;  %1780 = vmatpush.bf16.msra.mxu1 %v3183_v42  ;;  %v3209_v3 = vld [vmem:[#allocation6 + $0x118] sm:$0xff] }
 0x12e   :  { %v1364_v38 = vpop.f32.mrf.mxu0  ;;  %1863 = vmatpush.bf16.msra.mxu2 %v3192_v20 }
 0x12f   :  { %v1377_v40 = vpop.f32.mrf.mxu1  ;;  %v1365_v54 = vadd.f32 %v1364_v38, %v513_v50  ;;  %1951 = vmatpush.bf16.msra.mxu3 %v3200_v26 }
 0x130   :  { %1693 = vmatpush.bf16.msra.mxu0 %v3174_v41  ;;  %1781 = vmatpush.bf16.msra.mxu1 %v3182_v43  ;;  %v3208_v41 = vld [vmem:[#allocation6 + $0x110] sm:$0xff] }
 0x131   :  { %v1378_v63 = vadd.f32 %v1377_v40, %v1365_v54  ;;  %v516_v40 = vperm.slane %v3391_v47, 3 }
 0x132   :  { %1864 = vmatpush.bf16.msra.mxu2 %v3191_v25  ;;  %v3226_v25 = vld [vmem:[%s3433_s5 + $0x3] ss:$0 sm:$0xff] }
 0x133   :  { %1952 = vmatpush.bf16.msra.mxu3 %v3199_v29 }
 0x134   :  { %2030 = vmatpush.bf16.msrb.mxu0 %v3213_v32 }
 0x136   :  { %v1366_v45 = vpop.f32.mrf.mxu0  ;;  %1865 = vmatpush.bf16.msra.mxu2 %v3190_v28 }
 0x137   :  { %v1379_v46 = vpop.f32.mrf.mxu1  ;;  %1953 = vmatpush.bf16.msra.mxu3 %v3198_v33 }
 0x138   :  { %2031 = vmatpush.bf16.msrb.mxu0 %v3212_v39  ;;  %v3207_v46 = vld [vmem:[#allocation6 + $0x108] sm:$0xff] }
 0x13c   :  { %v1390_v48 = vpop.f32.mrf.mxu2  ;;  %2032 = vmatpush.bf16.msrb.mxu0 %v3211_v34 }
 0x13d   :  { %v1403_v49 = vpop.f32.mrf.mxu3  ;;  %v1391_v4 = vadd.f32 %v1390_v48, %v1378_v63 }
 0x13e   :  { %v1416_v51 = vpop.f32.mrf.mxu0 }
 0x13f   :  { %v1429_v52 = vpop.f32.mrf.mxu1  ;;  %v1417_v0 = vadd.f32 %v1416_v51, %v514_v55  ;;  %v1404_v11 = vadd.f32 %v1403_v49, %v1391_v4 }
 0x140   :  { %2033 = vmatpush.bf16.msrb.mxu0 %v3210_v59 }
 0x141   :  { %v1430_v5 = vadd.f32 %v1429_v52, %v1417_v0 }
 0x144   :  { %v1392_v56 = vpop.f32.mrf.mxu2  ;;  %2034 = vmatpush.bf16.msrb.mxu0 %v3209_v3 }
 0x145   :  { %v1405_v60 = vpop.f32.mrf.mxu3 }
 0x146   :  { %v1418_v1 = vpop.f32.mrf.mxu0 }
 0x147   :  { %v1431_v2 = vpop.f32.mrf.mxu1 }
 0x148   :  { %2035 = vmatpush.bf16.msrb.mxu0 %v3208_v41  ;;  %v517_v2 = vperm.slane %v3391_v47, 4  ;;  %v3224_v47 = vld [vmem:[%s3433_s5 + $0x1] ss:$0 sm:$0xff] }
 0x14c   :  { %v1442_v6 = vpop.f32.mrf.mxu2  ;;  %2036 = vmatpush.bf16.msrb.mxu0 %v3207_v46 }
 0x14d   :  { %v1443_v9 = vadd.f32 %v1442_v6, %v1430_v5  ;;  %v1455_v10 = vpop.f32.mrf.mxu3 }
 0x14f   :  { %v1456_v12 = vadd.f32 %v1455_v10, %v1443_v9  ;;  %v1468_v13 = vpop.f32.mrf.mxu0 }
 0x150   :  { %v1469_v42 = vadd.f32 %v1468_v13, %v515_v37  ;;  %2037 = vmatpush.bf16.msrb.mxu0 %v3206_v53 }
 0x151   :  { %v1615_v16 = vpack.c.bf16 %v1456_v12, %v1404_v11 }
 0x152   :  { %v1481_v17 = vpop.f32.mrf.mxu1 }
 0x153   :  { %v1723_v18 = vunpack.c.h.b16 %v1615_v16  ;;  %1694 = vmatmul.bf16.vlgmr.msra.gmra.mxu0 %v1615_v16  ;;  %v1482_v48 = vadd.f32 %v1481_v17, %v1469_v42 }
 0x154   :  { %v1444_v19 = vpop.f32.mrf.mxu2 }
 0x155   :  { %v1724_v22 = vpack.c.b16 %v1723_v18, %v1723_v18  ;;  %v1457_v23 = vpop.f32.mrf.mxu3 }
 0x157   :  { %1782 = vmatmul.bf16.vlgmr.msra.gmra.mxu1 %v1724_v22  ;;  %v1470_v24 = vpop.f32.mrf.mxu0  ;;  %v3225_v22 = vld [vmem:[%s3433_s5 + $0x2] ss:$0 sm:$0xff] }
 0x15a   :  { %v1483_v27 = vpop.f32.mrf.mxu1 }
 0x15c   :  { %v1494_v30 = vpop.f32.mrf.mxu2 }
 0x15d   :  { %v1507_v31 = vpop.f32.mrf.mxu3  ;;  %v1495_v50 = vadd.f32 %v1494_v30, %v1482_v48  ;;  %v3227_v30 = vld [vmem:[%s3433_s5 + $0x4] ss:$0 sm:$0xff] }
 0x15f   :  { %v1508_v56 = vadd.f32 %v1507_v31, %v1495_v50 }
 0x164   :  { %v1496_v44 = vpop.f32.mrf.mxu2 }
 0x165   :  { %v1509_v35 = vpop.f32.mrf.mxu3 }
 0x16f   :  { %v1520_v36 = vpop.f32.mrf.mxu0 }
 0x170   :  { %v1521_v43 = vadd.f32 %v1520_v36, %v516_v40 }
 0x172   :  { %v1533_v38 = vpop.f32.mrf.mxu1 }
 0x173   :  { %v1534_v51 = vadd.f32 %v1533_v38, %v1521_v43 }
 0x177   :  { %v1522_v45 = vpop.f32.mrf.mxu0 }
 0x17a   :  { %v1535_v49 = vpop.f32.mrf.mxu1 }
 0x17c   :  { %v1546_v52 = vpop.f32.mrf.mxu2 }
 0x17d   :  { %v1547_v54 = vadd.f32 %v1546_v52, %v1534_v51  ;;  %v1559_v55 = vpop.f32.mrf.mxu3 }
 0x17f   :  { %v1560_v57 = vadd.f32 %v1559_v55, %v1547_v54 }
 0x181   :  { %v1616_v58 = vpack.c.bf16 %v1560_v57, %v1508_v56 }
 0x183   :  { %v1895_v60 = vunpack.c.h.b16 %v1616_v58  ;;  %1866 = vmatmul.bf16.vlgmr.msra.gmra.mxu2 %v1616_v58 }
 0x184   :  { %v1548_v61 = vpop.f32.mrf.mxu2 }
 0x185   :  { %v1896_v62 = vpack.c.b16 %v1895_v60, %v1895_v60  ;;  %v1561_v63 = vpop.f32.mrf.mxu3 }
 0x187   :  { %1954 = vmatmul.bf16.vlgmr.msra.gmra.mxu3 %v1896_v62 }
 0x18f   :  { %v1572_v0 = vpop.f32.mrf.mxu0 }
 0x190   :  { %v1585_v1 = vpop.f32.mrf.mxu1  ;;  %v1573_v4 = vadd.f32 %v1572_v0, %v517_v2 }
 0x192   :  { %v1586_v7 = vadd.f32 %v1585_v1, %v1573_v4 }
 0x197   :  { %v1574_v5 = vpop.f32.mrf.mxu0 }
 0x198   :  { %v1587_v6 = vpop.f32.mrf.mxu1 }
 0x19c   :  { %v1598_v8 = vpop.f32.mrf.mxu2 }
 0x19d   :  { %v1599_v9 = vadd.f32 %v1598_v8, %v1586_v7  ;;  %v1611_v10 = vpop.f32.mrf.mxu3 }
 0x19f   :  { %v1612_v11 = vadd.f32 %v1611_v10, %v1599_v9 }
 0x1a1   :  { %v1617_v12 = vpack.c.bf16 %v1612_v11, %v1612_v11 }
 0x1a3   :  { %2038 = vmatmul.bf16.vlgmr.msrb.gmra.mxu0 %v1617_v12 }
 0x1a4   :  { %v1600_v13 = vpop.f32.mrf.mxu2 }
 0x1a5   :  { %v1613_v14 = vpop.f32.mrf.mxu3 }
 0x1d0   :  { %v1695_v16 = vpop.f32.mrf.mxu0 }
 0x1d1   :  { %v1696_v17 = vadd.f32 %v3223_v15, %v1695_v16 }
 0x1d3   :  { %1699 = vst [vmem:[%s3434_s6] sm:$0xff] %v1696_v17 }
 0x1d4   :  { %v1783_v18 = vpop.f32.mrf.mxu1 }
 0x1d5   :  { %v1784_v19 = vadd.f32 %v3224_v47, %v1783_v18 }
 0x1d7   :  { %1787 = vst [vmem:[%s3434_s6 + $0x8] sm:$0xff] %v1784_v19 }
 0x1d8   :  { %v1697_v20 = vpop.f32.mrf.mxu0 }
 0x1dc   :  { %v1785_v21 = vpop.f32.mrf.mxu1 }
 0x206   :  { %v1867_v23 = vpop.f32.mrf.mxu2 }
 0x207   :  { %v1868_v24 = vadd.f32 %v3225_v22, %v1867_v23 }
 0x209   :  { %1871 = vst [vmem:[%s3434_s6 + $0x10] sm:$0xff] %v1868_v24 }
 0x20a   :  { %v1955_v26 = vpop.f32.mrf.mxu3 }
 0x20b   :  { %v1956_v27 = vadd.f32 %v3226_v25, %v1955_v26 }
 0x20d   :  { %1959 = vst [vmem:[%s3434_s6 + $0x18] sm:$0xff] %v1956_v27 }
 0x20e   :  { %v1869_v28 = vpop.f32.mrf.mxu2 }
 0x212   :  { %v1957_v29 = vpop.f32.mrf.mxu3 }
 0x220   :  { %v2039_v31 = vpop.f32.mrf.mxu0 }
 0x221   :  { %v2040_v32 = vadd.f32 %v3227_v30, %v2039_v31 }
 0x223   :  { %2043 = vst [vmem:[%s3434_s6 + $0x20] sm:$0xff] %v2040_v32 }
 0x228   :  { %v2041_v33 = vpop.f32.mrf.mxu0 }
 0x229   :  { %2048 = vsyncpa [#allocation3], 1 }
 0x22a   :  { %2049 = vsyncpa [#allocation5], 1 }

</bundles_post_ra>
